<compile_context>
chip_gen: v7x
topology: tpu7x:2x2x1
jax: 0.10.0
libtpu: 0.0.40
codegen_flags: <defaults>
</compile_context>

<pallas_src>
import functools

import jax
import jax.numpy as jnp
from jax import lax
from jax.experimental import pallas as pl
from jax.experimental.pallas import tpu as pltpu

K = 4  # PC-DARTS partial-channel factor (self.k)
BASIC_OP_LIST = ("none", "skip_connect", "nor_conv_1x1", "nor_conv_3x3", "avg_pool_3x3")
BN_EPS = 1e-5
# tap index t = (dy+1)*3 + (dx+1)  <=>  conv kernel position (ky, kx) = (dy+1, dx+1)
_TAPS = tuple((dy, dx) for dy in (-1, 0, 1) for dx in (-1, 0, 1))


def _pc_mixed_part_kernel(alpha_ref, x_ref, coords_ref, w_ref, o_ref, *,
                          img_h, img_w, cb, nblk):
    """Mixed-op result on one block of the partial channels.

    alpha_ref : (5,)              SMEM  architecture weights
    x_ref     : (Cq, NHW)         VMEM  f32 channel-major partial-channel input (resident)
    coords_ref: (2, NHW)          VMEM  f32 rows: h coordinate, w coordinate
    w_ref     : (1, 9, 2*Cb, Cq)  VMEM  bf16 fused conv weights (rows 0:Cb = 3x3 tap slice,
                                        rows Cb:2Cb = 1x1 weights at the center tap only)
    o_ref     : (Cb, NHW)         VMEM  f32 mixed output rows, lane-dense
    """
    nhw = x_ref.shape[1]

    # PC-DARTS gating: ops whose architecture weight is in (0, 1] contribute
    # (weight == 1 -> unscaled); others are skipped.  Op 0 ('none') is exact zero.
    def eff(i):
        a = alpha_ref[i]
        return jnp.where(jnp.logical_and(a > 0.0, a <= 1.0), a, 0.0)

    w_skip, w_c1, w_c3, w_avg = eff(1), eff(2), eff(3), eff(4)

    # Boundary-validity masks (float 0/1) from the (h, w) coordinate rows.
    hcoord = coords_ref[0:1, :]                                  # (1, NHW)
    wcoord = coords_ref[1:2, :]
    one = jnp.ones_like(hcoord)
    h_ok = {-1: (hcoord >= 1.0).astype(jnp.float32),
            0: one,
            1: (hcoord <= float(img_h - 2)).astype(jnp.float32)}
    w_ok = {-1: (wcoord >= 1.0).astype(jnp.float32),
            0: one,
            1: (wcoord <= float(img_w - 2)).astype(jnp.float32)}

    # avg_pool_3x3 (count_include_pad=False) divisor with the alpha folded in.
    cnt = (h_ok[-1] + one + h_ok[1]) * (w_ok[-1] + one + w_ok[1])
    inv_pool = w_avg / cnt                                       # (1, NHW)

    x_all = x_ref[...]                                           # (Cq, NHW) f32
    if nblk == 1:
        x_blk = x_all                                            # block == all channels
    else:
        start = pl.multiple_of(pl.program_id(0) * cb, cb)
        x_blk = x_ref[pl.ds(start, cb), :]                       # (Cb, NHW)

    # Single pass over the 9 taps: each tap is built in VMEM with a lane roll +
    # boundary mask (no im2col in HBM).  The ReLU'd tap feeds the fused
    # (3x3 | 1x1) MXU matmul (bf16 operands, f32 accumulate); the raw tap feeds the
    # avg-pool box sum.  Only one (Cq, NHW)-sized tap is live at a time, and the
    # independent matmul / psum accumulations give the scheduler ILP.
    acc = jnp.zeros((2 * cb, nhw), jnp.float32)
    psum = jnp.zeros_like(x_blk)
    for t, (dy, dx) in enumerate(_TAPS):
        shift = (-(dy * img_w + dx)) % nhw
        mask = h_ok[dy] * w_ok[dx]

        def tap_of(src):
            r = src if shift == 0 else pltpu.roll(src, shift=shift, axis=1)
            return r if (dy == 0 and dx == 0) else r * mask

        tap_all = tap_of(x_all)                                  # (Cq, NHW) f32
        rtap = jnp.maximum(tap_all, 0.0).astype(w_ref.dtype)     # ReLU -> bf16 MXU operand
        acc = acc + jnp.dot(w_ref[0, t], rtap,                   # (2Cb,Cq) @ (Cq,NHW)
                            preferred_element_type=jnp.float32)
        psum = psum + (tap_all if nblk == 1 else tap_of(x_blk))  # raw 3x3 box sum

    acc3 = acc[:cb]                                              # nor_conv_3x3 pre-BN
    acc1 = acc[cb:]                                              # nor_conv_1x1 pre-BN

    # BatchNorm2d(affine=False), training-mode batch stats over the full NHW axis
    # (resident per grid step), two-pass f32, alpha folded into the scale.
    def bn_fold(y, wop):
        mean = jnp.mean(y, axis=1, keepdims=True)
        d = y - mean
        var = jnp.mean(d * d, axis=1, keepdims=True)
        return d * (wop * lax.rsqrt(var + BN_EPS))

    mixed = (w_skip * x_blk            # skip_connect (identity)
             + bn_fold(acc3, w_c3)     # nor_conv_3x3
             + bn_fold(acc1, w_c1)     # nor_conv_1x1
             + psum * inv_pool)        # avg_pool_3x3
    o_ref[...] = mixed.astype(o_ref.dtype)


def _pick_block_channels(cq, max_cb):
    """Largest output-channel block: min(cq, max_cb), a divisor of cq that is a
    multiple of 8 (clean sublane tiling of the (Cb, NHW) output block)."""
    if cq <= max_cb:
        return cq
    cb = (max_cb // 8) * 8
    while cb >= 8:
        if cq % cb == 0:
            return cb
        cb -= 8
    return cq


def _pick_vmem_limit():
    """Generation-aware scoped-VMEM budget: ~75% of physical (≈48 MiB on v7x's 64 MiB,
    capped at 100 MiB on v5e/v6e's 128 MiB); conservative fallback if unavailable."""
    try:
        cap = int(pltpu.get_tpu_info().vmem_capacity_bytes)
    except Exception:
        cap = 64 * 1024 * 1024
    return int(min(cap * 3 // 4, 100 * 1024 * 1024))


def pc_mixed_op(x, weights, w_conv1, w_conv3, *, max_block_channels=128):
    """PcMixedOp.forward (stride=1): channel_shuffle(cat([part_x, xtemp2], 1), k=4)."""
    N, C, H, W = x.shape
    assert C % K == 0, "channel count must be divisible by k=4"
    Cq = C // K
    NHW = N * H * W

    x = x.astype(jnp.float32)
    xtemp = x[:, :Cq]                          # partial-channel slice (kernel input)
    xtemp2 = x[:, Cq:]                         # pass-through channels (never enter kernel)

    # Channel-major, lane-dense flattening: the ONLY image data the kernel reads.
    x_flat = jnp.transpose(xtemp, (1, 0, 2, 3)).reshape(Cq, NHW)

    # (h, w) coordinate rows for the in-kernel boundary masks / pool divisor.
    hh = jnp.arange(H, dtype=jnp.float32)
    ww = jnp.arange(W, dtype=jnp.float32)
    hmap = jnp.broadcast_to(hh[:, None], (H, W)).reshape(-1)
    wmap = jnp.broadcast_to(ww[None, :], (H, W)).reshape(-1)
    coords = jnp.stack([jnp.tile(hmap, N), jnp.tile(wmap, N)], axis=0)        # (2, NHW)

    # Output-channel blocks (independent: BN stats are per output channel) -> "parallel" grid.
    Cb = _pick_block_channels(Cq, max_block_channels)
    nblk = Cq // Cb
    assert Cb == Cq or Cb % 8 == 0

    # Fused conv weights: per tap t, rows [0:Cb] = w3[:, :, ky, kx] for this block,
    # rows [Cb:2Cb] = w1 for this block, placed at the center tap only (zeros elsewhere).
    w3_t = jnp.transpose(w_conv3.astype(jnp.float32), (2, 3, 0, 1)).reshape(9, Cq, Cq)
    w1_t = jnp.zeros((9, Cq, Cq), jnp.float32).at[4].set(w_conv1.astype(jnp.float32))
    wcmb = jnp.concatenate([w3_t.reshape(9, nblk, Cb, Cq),
                            w1_t.reshape(9, nblk, Cb, Cq)], axis=2)           # (9,nblk,2Cb,Cq)
    wcmb = jnp.transpose(wcmb, (1, 0, 2, 3)).astype(jnp.bfloat16)             # (nblk,9,2Cb,Cq)

    alphas = weights.astype(jnp.float32)

    kernel = functools.partial(_pc_mixed_part_kernel,
                               img_h=H, img_w=W, cb=Cb, nblk=nblk)

    part = pl.pallas_call(
        kernel,
        out_shape=jax.ShapeDtypeStruct((Cq, NHW), jnp.float32),
        grid=(nblk,),
        in_specs=[
            pl.BlockSpec(memory_space=pltpu.MemorySpace.SMEM),         # alphas (whole, SMEM)
            pl.BlockSpec((Cq, NHW), lambda i: (0, 0)),                 # x, resident all blocks
            pl.BlockSpec((2, NHW), lambda i: (0, 0)),                  # (h, w) coordinates
            pl.BlockSpec((1, 9, 2 * Cb, Cq), lambda i: (i, 0, 0, 0)),  # fused conv weights
        ],
        out_specs=pl.BlockSpec((Cb, NHW), lambda i: (i, 0)),           # lane-dense output
        compiler_params=pltpu.CompilerParams(
            dimension_semantics=("parallel",),
            vmem_limit_bytes=_pick_vmem_limit()),
    )(alphas, x_flat, coords, wcmb)

    # Wrapper layout glue: concat with pass-through channels + channel_shuffle(k=4).
    part_nchw = part.reshape(Cq, N, H, W).transpose(1, 0, 2, 3)               # (N, Cq, H, W)
    ans = jnp.concatenate([part_nchw, xtemp2], axis=1)                        # (N, C, H, W)
    ans = ans.reshape(N, K, Cq, H, W).transpose(0, 2, 1, 3, 4).reshape(N, C, H, W)
    return ans


def pc_mixed_op_reference(x, weights, w_conv1, w_conv3):
    """Pure-JAX reference of the PyTorch forward (stride=1), f32 highest precision."""
    N, C, H, W = x.shape
    Cq = C // K
    x = x.astype(jnp.float32)
    xtemp = x[:, :Cq]
    xtemp2 = x[:, Cq:]

    def bn(y):
        mean = jnp.mean(y, axis=(0, 2, 3), keepdims=True)
        var = jnp.mean((y - mean) ** 2, axis=(0, 2, 3), keepdims=True)
        return (y - mean) / jnp.sqrt(var + BN_EPS)

    r = jnp.maximum(xtemp, 0.0)
    conv1 = jnp.einsum("oi,nihw->nohw", w_conv1, r, precision=lax.Precision.HIGHEST)
    conv3 = lax.conv_general_dilated(
        r, w_conv3, window_strides=(1, 1), padding="SAME",
        dimension_numbers=("NCHW", "OIHW", "NCHW"),
        precision=lax.Precision.HIGHEST)
    ssum = lax.reduce_window(xtemp, 0.0, lax.add, (1, 1, 3, 3), (1, 1, 1, 1), "SAME")
    cnt = lax.reduce_window(jnp.ones_like(xtemp), 0.0, lax.add,
                            (1, 1, 3, 3), (1, 1, 1, 1), "SAME")
    ops = [jnp.zeros_like(xtemp), xtemp, bn(conv1), bn(conv3), ssum / cnt]

    part = jnp.zeros_like(xtemp)
    for i in range(len(ops)):
        wi = jnp.where((weights[i] > 0) & (weights[i] <= 1), weights[i], 0.0)
        part = part + wi * ops[i]

    ans = jnp.concatenate([part, xtemp2], axis=1)
    ans = ans.reshape(N, K, Cq, H, W).transpose(0, 2, 1, 3, 4).reshape(N, C, H, W)
    return ans


if __name__ == "__main__":
    def run_case(key, N, C, H, W, max_block_channels=128):
        Cq = C // K
        kx, kw1, kw3, ka = jax.random.split(key, 4)
        x = jax.random.normal(kx, (N, C, H, W), jnp.float32)
        # synthetic parameters (shapes follow OPS_[primitive](C//4, C//4, 1, affine=False))
        w_conv1 = 0.3 * jax.random.normal(kw1, (Cq, Cq), jnp.float32)          # 1x1 conv weight
        w_conv3 = 0.1 * jax.random.normal(kw3, (Cq, Cq, 3, 3), jnp.float32)    # 3x3 conv weight
        weights = jax.nn.softmax(
            jax.random.normal(ka, (len(BASIC_OP_LIST),), jnp.float32))

        out = jax.block_until_ready(
            pc_mixed_op(x, weights, w_conv1, w_conv3,
                        max_block_channels=max_block_channels))
        ref = pc_mixed_op_reference(x, weights, w_conv1, w_conv3)
        assert out.shape == (N, C, H, W)
        # Tolerance sized for bf16 MXU operands on the conv paths (~2^-9 relative
        # rounding per operand vs the f32 HIGHEST-precision reference); dropping the
        # two bf16 casts in the kernel/wrapper brings agreement under 1e-3.
        if not jnp.allclose(out, ref, atol=1e-2, rtol=1e-2):
            raise AssertionError(
                f"kernel/reference mismatch, max abs err = {jnp.max(jnp.abs(out - ref))}")

    key = jax.random.PRNGKey(0)
    k1, k2, k3 = jax.random.split(key, 3)
    run_case(k1, N=2, C=64, H=16, W=16)                         # Cq=16, single block
    run_case(k2, N=2, C=8, H=16, W=16)                          # Cq=2, tiny-channel path
    run_case(k3, N=2, C=64, H=16, W=16, max_block_channels=8)   # Cq=16, 2 blocks (grid path)
    print("KERNEL_OK")
</pallas_src>

<mosaic_0001>
module attributes {stable_mosaic.version = 11 : i64} {
  func.func @_pc_mixed_part_kernel(%arg0: i32, %arg1: memref<5xf32, #tpu.memory_space<smem>>, %arg2: memref<16x512xf32, #tpu.memory_space<vmem>>, %arg3: memref<2x512xf32, #tpu.memory_space<vmem>>, %arg4: memref<1x9x32x16xbf16, #tpu.memory_space<vmem>>, %arg5: memref<16x512xf32, #tpu.memory_space<vmem>>) attributes {dimension_semantics = [#tpu.dimension_semantics<parallel>], iteration_bounds = array<i64: 1>, scalar_prefetch = 0 : i64, scratch_operands = 0 : i64, tpu.core_type = #tpu.core_type<tc>, window_params = [{transform_indices = @transform_0, window_bounds = array<i64: 5>}, {pipeline_mode = #tpu.pipeline_mode<synchronous>, transform_indices = @transform_1, window_bounds = array<i64: 16, 512>}, {pipeline_mode = #tpu.pipeline_mode<synchronous>, transform_indices = @transform_2, window_bounds = array<i64: 2, 512>}, {transform_indices = @transform_3, window_bounds = array<i64: 1, 9, 32, 16>}, {transform_indices = @transform_4, window_bounds = array<i64: 16, 512>}]} {
    %c1 = arith.constant 1 : index
    %0 = memref.load %arg1[%c1] : memref<5xf32, #tpu.memory_space<smem>>
    %cst = arith.constant 0.000000e+00 : f32
    %1 = arith.cmpf ogt, %0, %cst : f32
    %cst_0 = arith.constant 1.000000e+00 : f32
    %2 = arith.cmpf ole, %0, %cst_0 : f32
    %3 = arith.andi %1, %2 : i1
    %cst_1 = arith.constant 0.000000e+00 : f32
    %4 = arith.select %3, %0, %cst_1 : f32
    %c2 = arith.constant 2 : index
    %5 = memref.load %arg1[%c2] : memref<5xf32, #tpu.memory_space<smem>>
    %cst_2 = arith.constant 0.000000e+00 : f32
    %6 = arith.cmpf ogt, %5, %cst_2 : f32
    %cst_3 = arith.constant 1.000000e+00 : f32
    %7 = arith.cmpf ole, %5, %cst_3 : f32
    %8 = arith.andi %6, %7 : i1
    %cst_4 = arith.constant 0.000000e+00 : f32
    %9 = arith.select %8, %5, %cst_4 : f32
    %c3 = arith.constant 3 : index
    %10 = memref.load %arg1[%c3] : memref<5xf32, #tpu.memory_space<smem>>
    %cst_5 = arith.constant 0.000000e+00 : f32
    %11 = arith.cmpf ogt, %10, %cst_5 : f32
    %cst_6 = arith.constant 1.000000e+00 : f32
    %12 = arith.cmpf ole, %10, %cst_6 : f32
    %13 = arith.andi %11, %12 : i1
    %cst_7 = arith.constant 0.000000e+00 : f32
    %14 = arith.select %13, %10, %cst_7 : f32
    %c4 = arith.constant 4 : index
    %15 = memref.load %arg1[%c4] : memref<5xf32, #tpu.memory_space<smem>>
    %cst_8 = arith.constant 0.000000e+00 : f32
    %16 = arith.cmpf ogt, %15, %cst_8 : f32
    %cst_9 = arith.constant 1.000000e+00 : f32
    %17 = arith.cmpf ole, %15, %cst_9 : f32
    %18 = arith.andi %16, %17 : i1
    %cst_10 = arith.constant 0.000000e+00 : f32
    %19 = arith.select %18, %15, %cst_10 : f32
    %c0 = arith.constant 0 : index
    %c0_11 = arith.constant 0 : index
    %20 = vector.load %arg3[%c0, %c0_11] : memref<2x512xf32, #tpu.memory_space<vmem>>, vector<1x512xf32>
    %c1_12 = arith.constant 1 : index
    %c0_13 = arith.constant 0 : index
    %21 = vector.load %arg3[%c1_12, %c0_13] : memref<2x512xf32, #tpu.memory_space<vmem>>, vector<1x512xf32>
    %cst_14 = arith.constant 1.000000e+00 : f32
    %22 = vector.broadcast %cst_14 : f32 to vector<1x512xf32>
    %cst_15 = arith.constant 1.000000e+00 : f32
    %23 = vector.broadcast %cst_15 : f32 to vector<1x512xf32>
    %24 = arith.cmpf oge, %20, %23 : vector<1x512xf32>
    %25 = arith.extui %24 : vector<1x512xi1> to vector<1x512xi32>
    %26 = arith.sitofp %25 : vector<1x512xi32> to vector<1x512xf32>
    %cst_16 = arith.constant 1.400000e+01 : f32
    %27 = vector.broadcast %cst_16 : f32 to vector<1x512xf32>
    %28 = arith.cmpf ole, %20, %27 : vector<1x512xf32>
    %29 = arith.extui %28 : vector<1x512xi1> to vector<1x512xi32>
    %30 = arith.sitofp %29 : vector<1x512xi32> to vector<1x512xf32>
    %cst_17 = arith.constant 1.000000e+00 : f32
    %31 = vector.broadcast %cst_17 : f32 to vector<1x512xf32>
    %32 = arith.cmpf oge, %21, %31 : vector<1x512xf32>
    %33 = arith.extui %32 : vector<1x512xi1> to vector<1x512xi32>
    %34 = arith.sitofp %33 : vector<1x512xi32> to vector<1x512xf32>
    %cst_18 = arith.constant 1.400000e+01 : f32
    %35 = vector.broadcast %cst_18 : f32 to vector<1x512xf32>
    %36 = arith.cmpf ole, %21, %35 : vector<1x512xf32>
    %37 = arith.extui %36 : vector<1x512xi1> to vector<1x512xi32>
    %38 = arith.sitofp %37 : vector<1x512xi32> to vector<1x512xf32>
    %39 = arith.addf %26, %22 : vector<1x512xf32>
    %40 = arith.addf %39, %30 : vector<1x512xf32>
    %41 = arith.addf %34, %22 : vector<1x512xf32>
    %42 = arith.addf %41, %38 : vector<1x512xf32>
    %43 = arith.mulf %40, %42 : vector<1x512xf32>
    %44 = vector.broadcast %19 : f32 to vector<1x512xf32>
    %45 = arith.divf %44, %43 : vector<1x512xf32>
    %c0_19 = arith.constant 0 : index
    %c0_20 = arith.constant 0 : index
    %46 = vector.load %arg2[%c0_19, %c0_20] : memref<16x512xf32, #tpu.memory_space<vmem>>, vector<16x512xf32>
    %cst_21 = arith.constant 0.000000e+00 : f32
    %47 = vector.broadcast %cst_21 : f32 to vector<32x512xf32>
    %cst_22 = arith.constant 0.000000e+00 : f32
    %48 = vector.broadcast %cst_22 : f32 to vector<16x512xf32>
    %49 = arith.mulf %26, %34 : vector<1x512xf32>
    %c17_i32 = arith.constant 17 : i32
    %50 = tpu.dynamic_rotate %46 by %c17_i32 dim 1 : vector<16x512xf32>, i32 -> vector<16x512xf32>
    %51 = vector.broadcast %49 : vector<1x512xf32> to vector<16x512xf32>
    %52 = arith.mulf %50, %51 : vector<16x512xf32>
    %cst_23 = arith.constant 0.000000e+00 : f32
    %53 = vector.broadcast %cst_23 : f32 to vector<16x512xf32>
    %54 = arith.maximumf %52, %53 : vector<16x512xf32>
    %55 = arith.truncf %54 : vector<16x512xf32> to vector<16x512xbf16>
    %c0_24 = arith.constant 0 : index
    %c0_25 = arith.constant 0 : index
    %c0_26 = arith.constant 0 : index
    %c0_27 = arith.constant 0 : index
    %56 = vector.load %arg4[%c0_24, %c0_25, %c0_26, %c0_27] : memref<1x9x32x16xbf16, #tpu.memory_space<vmem>>, vector<1x1x32x16xbf16>
    %57 = vector.shape_cast %56 : vector<1x1x32x16xbf16> to vector<32x16xbf16>
    %cst_28 = arith.constant dense<0.000000e+00> : vector<32x512xf32>
    %58 = tpu.matmul %57, %55, %cst_28 {dimension_numbers = #tpu.dot_dimension_numbers<[1], [0], [0], [1], [0, 0, 1, 1], [], []>} : vector<32x16xbf16>, vector<16x512xbf16>, vector<32x512xf32> -> vector<32x512xf32>
    %59 = arith.addf %47, %58 : vector<32x512xf32>
    %60 = arith.addf %48, %52 : vector<16x512xf32>
    %61 = arith.mulf %26, %22 : vector<1x512xf32>
    %c16_i32 = arith.constant 16 : i32
    %62 = tpu.dynamic_rotate %46 by %c16_i32 dim 1 : vector<16x512xf32>, i32 -> vector<16x512xf32>
    %63 = vector.broadcast %61 : vector<1x512xf32> to vector<16x512xf32>
    %64 = arith.mulf %62, %63 : vector<16x512xf32>
    %cst_29 = arith.constant 0.000000e+00 : f32
    %65 = vector.broadcast %cst_29 : f32 to vector<16x512xf32>
    %66 = arith.maximumf %64, %65 : vector<16x512xf32>
    %67 = arith.truncf %66 : vector<16x512xf32> to vector<16x512xbf16>
    %c0_30 = arith.constant 0 : index
    %c1_31 = arith.constant 1 : index
    %c0_32 = arith.constant 0 : index
    %c0_33 = arith.constant 0 : index
    %68 = vector.load %arg4[%c0_30, %c1_31, %c0_32, %c0_33] : memref<1x9x32x16xbf16, #tpu.memory_space<vmem>>, vector<1x1x32x16xbf16>
    %69 = vector.shape_cast %68 : vector<1x1x32x16xbf16> to vector<32x16xbf16>
    %cst_34 = arith.constant dense<0.000000e+00> : vector<32x512xf32>
    %70 = tpu.matmul %69, %67, %cst_34 {dimension_numbers = #tpu.dot_dimension_numbers<[1], [0], [0], [1], [0, 0, 1, 1], [], []>} : vector<32x16xbf16>, vector<16x512xbf16>, vector<32x512xf32> -> vector<32x512xf32>
    %71 = arith.addf %59, %70 : vector<32x512xf32>
    %72 = arith.addf %60, %64 : vector<16x512xf32>
    %73 = arith.mulf %26, %38 : vector<1x512xf32>
    %c15_i32 = arith.constant 15 : i32
    %74 = tpu.dynamic_rotate %46 by %c15_i32 dim 1 : vector<16x512xf32>, i32 -> vector<16x512xf32>
    %75 = vector.broadcast %73 : vector<1x512xf32> to vector<16x512xf32>
    %76 = arith.mulf %74, %75 : vector<16x512xf32>
    %cst_35 = arith.constant 0.000000e+00 : f32
    %77 = vector.broadcast %cst_35 : f32 to vector<16x512xf32>
    %78 = arith.maximumf %76, %77 : vector<16x512xf32>
    %79 = arith.truncf %78 : vector<16x512xf32> to vector<16x512xbf16>
    %c0_36 = arith.constant 0 : index
    %c2_37 = arith.constant 2 : index
    %c0_38 = arith.constant 0 : index
    %c0_39 = arith.constant 0 : index
    %80 = vector.load %arg4[%c0_36, %c2_37, %c0_38, %c0_39] : memref<1x9x32x16xbf16, #tpu.memory_space<vmem>>, vector<1x1x32x16xbf16>
    %81 = vector.shape_cast %80 : vector<1x1x32x16xbf16> to vector<32x16xbf16>
    %cst_40 = arith.constant dense<0.000000e+00> : vector<32x512xf32>
    %82 = tpu.matmul %81, %79, %cst_40 {dimension_numbers = #tpu.dot_dimension_numbers<[1], [0], [0], [1], [0, 0, 1, 1], [], []>} : vector<32x16xbf16>, vector<16x512xbf16>, vector<32x512xf32> -> vector<32x512xf32>
    %83 = arith.addf %71, %82 : vector<32x512xf32>
    %84 = arith.addf %72, %76 : vector<16x512xf32>
    %85 = arith.mulf %22, %34 : vector<1x512xf32>
    %c1_i32 = arith.constant 1 : i32
    %86 = tpu.dynamic_rotate %46 by %c1_i32 dim 1 : vector<16x512xf32>, i32 -> vector<16x512xf32>
    %87 = vector.broadcast %85 : vector<1x512xf32> to vector<16x512xf32>
    %88 = arith.mulf %86, %87 : vector<16x512xf32>
    %cst_41 = arith.constant 0.000000e+00 : f32
    %89 = vector.broadcast %cst_41 : f32 to vector<16x512xf32>
    %90 = arith.maximumf %88, %89 : vector<16x512xf32>
    %91 = arith.truncf %90 : vector<16x512xf32> to vector<16x512xbf16>
    %c0_42 = arith.constant 0 : index
    %c3_43 = arith.constant 3 : index
    %c0_44 = arith.constant 0 : index
    %c0_45 = arith.constant 0 : index
    %92 = vector.load %arg4[%c0_42, %c3_43, %c0_44, %c0_45] : memref<1x9x32x16xbf16, #tpu.memory_space<vmem>>, vector<1x1x32x16xbf16>
    %93 = vector.shape_cast %92 : vector<1x1x32x16xbf16> to vector<32x16xbf16>
    %cst_46 = arith.constant dense<0.000000e+00> : vector<32x512xf32>
    %94 = tpu.matmul %93, %91, %cst_46 {dimension_numbers = #tpu.dot_dimension_numbers<[1], [0], [0], [1], [0, 0, 1, 1], [], []>} : vector<32x16xbf16>, vector<16x512xbf16>, vector<32x512xf32> -> vector<32x512xf32>
    %95 = arith.addf %83, %94 : vector<32x512xf32>
    %96 = arith.addf %84, %88 : vector<16x512xf32>
    %cst_47 = arith.constant 0.000000e+00 : f32
    %97 = vector.broadcast %cst_47 : f32 to vector<16x512xf32>
    %98 = arith.maximumf %46, %97 : vector<16x512xf32>
    %99 = arith.truncf %98 : vector<16x512xf32> to vector<16x512xbf16>
    %c0_48 = arith.constant 0 : index
    %c4_49 = arith.constant 4 : index
    %c0_50 = arith.constant 0 : index
    %c0_51 = arith.constant 0 : index
    %100 = vector.load %arg4[%c0_48, %c4_49, %c0_50, %c0_51] : memref<1x9x32x16xbf16, #tpu.memory_space<vmem>>, vector<1x1x32x16xbf16>
    %101 = vector.shape_cast %100 : vector<1x1x32x16xbf16> to vector<32x16xbf16>
    %cst_52 = arith.constant dense<0.000000e+00> : vector<32x512xf32>
    %102 = tpu.matmul %101, %99, %cst_52 {dimension_numbers = #tpu.dot_dimension_numbers<[1], [0], [0], [1], [0, 0, 1, 1], [], []>} : vector<32x16xbf16>, vector<16x512xbf16>, vector<32x512xf32> -> vector<32x512xf32>
    %103 = arith.addf %95, %102 : vector<32x512xf32>
    %104 = arith.addf %96, %46 : vector<16x512xf32>
    %105 = arith.mulf %22, %38 : vector<1x512xf32>
    %c511_i32 = arith.constant 511 : i32
    %106 = tpu.dynamic_rotate %46 by %c511_i32 dim 1 : vector<16x512xf32>, i32 -> vector<16x512xf32>
    %107 = vector.broadcast %105 : vector<1x512xf32> to vector<16x512xf32>
    %108 = arith.mulf %106, %107 : vector<16x512xf32>
    %cst_53 = arith.constant 0.000000e+00 : f32
    %109 = vector.broadcast %cst_53 : f32 to vector<16x512xf32>
    %110 = arith.maximumf %108, %109 : vector<16x512xf32>
    %111 = arith.truncf %110 : vector<16x512xf32> to vector<16x512xbf16>
    %c0_54 = arith.constant 0 : index
    %c5 = arith.constant 5 : index
    %c0_55 = arith.constant 0 : index
    %c0_56 = arith.constant 0 : index
    %112 = vector.load %arg4[%c0_54, %c5, %c0_55, %c0_56] : memref<1x9x32x16xbf16, #tpu.memory_space<vmem>>, vector<1x1x32x16xbf16>
    %113 = vector.shape_cast %112 : vector<1x1x32x16xbf16> to vector<32x16xbf16>
    %cst_57 = arith.constant dense<0.000000e+00> : vector<32x512xf32>
    %114 = tpu.matmul %113, %111, %cst_57 {dimension_numbers = #tpu.dot_dimension_numbers<[1], [0], [0], [1], [0, 0, 1, 1], [], []>} : vector<32x16xbf16>, vector<16x512xbf16>, vector<32x512xf32> -> vector<32x512xf32>
    %115 = arith.addf %103, %114 : vector<32x512xf32>
    %116 = arith.addf %104, %108 : vector<16x512xf32>
    %117 = arith.mulf %30, %34 : vector<1x512xf32>
    %c497_i32 = arith.constant 497 : i32
    %118 = tpu.dynamic_rotate %46 by %c497_i32 dim 1 : vector<16x512xf32>, i32 -> vector<16x512xf32>
    %119 = vector.broadcast %117 : vector<1x512xf32> to vector<16x512xf32>
    %120 = arith.mulf %118, %119 : vector<16x512xf32>
    %cst_58 = arith.constant 0.000000e+00 : f32
    %121 = vector.broadcast %cst_58 : f32 to vector<16x512xf32>
    %122 = arith.maximumf %120, %121 : vector<16x512xf32>
    %123 = arith.truncf %122 : vector<16x512xf32> to vector<16x512xbf16>
    %c0_59 = arith.constant 0 : index
    %c6 = arith.constant 6 : index
    %c0_60 = arith.constant 0 : index
    %c0_61 = arith.constant 0 : index
    %124 = vector.load %arg4[%c0_59, %c6, %c0_60, %c0_61] : memref<1x9x32x16xbf16, #tpu.memory_space<vmem>>, vector<1x1x32x16xbf16>
    %125 = vector.shape_cast %124 : vector<1x1x32x16xbf16> to vector<32x16xbf16>
    %cst_62 = arith.constant dense<0.000000e+00> : vector<32x512xf32>
    %126 = tpu.matmul %125, %123, %cst_62 {dimension_numbers = #tpu.dot_dimension_numbers<[1], [0], [0], [1], [0, 0, 1, 1], [], []>} : vector<32x16xbf16>, vector<16x512xbf16>, vector<32x512xf32> -> vector<32x512xf32>
    %127 = arith.addf %115, %126 : vector<32x512xf32>
    %128 = arith.addf %116, %120 : vector<16x512xf32>
    %129 = arith.mulf %30, %22 : vector<1x512xf32>
    %c496_i32 = arith.constant 496 : i32
    %130 = tpu.dynamic_rotate %46 by %c496_i32 dim 1 : vector<16x512xf32>, i32 -> vector<16x512xf32>
    %131 = vector.broadcast %129 : vector<1x512xf32> to vector<16x512xf32>
    %132 = arith.mulf %130, %131 : vector<16x512xf32>
    %cst_63 = arith.constant 0.000000e+00 : f32
    %133 = vector.broadcast %cst_63 : f32 to vector<16x512xf32>
    %134 = arith.maximumf %132, %133 : vector<16x512xf32>
    %135 = arith.truncf %134 : vector<16x512xf32> to vector<16x512xbf16>
    %c0_64 = arith.constant 0 : index
    %c7 = arith.constant 7 : index
    %c0_65 = arith.constant 0 : index
    %c0_66 = arith.constant 0 : index
    %136 = vector.load %arg4[%c0_64, %c7, %c0_65, %c0_66] : memref<1x9x32x16xbf16, #tpu.memory_space<vmem>>, vector<1x1x32x16xbf16>
    %137 = vector.shape_cast %136 : vector<1x1x32x16xbf16> to vector<32x16xbf16>
    %cst_67 = arith.constant dense<0.000000e+00> : vector<32x512xf32>
    %138 = tpu.matmul %137, %135, %cst_67 {dimension_numbers = #tpu.dot_dimension_numbers<[1], [0], [0], [1], [0, 0, 1, 1], [], []>} : vector<32x16xbf16>, vector<16x512xbf16>, vector<32x512xf32> -> vector<32x512xf32>
    %139 = arith.addf %127, %138 : vector<32x512xf32>
    %140 = arith.addf %128, %132 : vector<16x512xf32>
    %141 = arith.mulf %30, %38 : vector<1x512xf32>
    %c495_i32 = arith.constant 495 : i32
    %142 = tpu.dynamic_rotate %46 by %c495_i32 dim 1 : vector<16x512xf32>, i32 -> vector<16x512xf32>
    %143 = vector.broadcast %141 : vector<1x512xf32> to vector<16x512xf32>
    %144 = arith.mulf %142, %143 : vector<16x512xf32>
    %cst_68 = arith.constant 0.000000e+00 : f32
    %145 = vector.broadcast %cst_68 : f32 to vector<16x512xf32>
    %146 = arith.maximumf %144, %145 : vector<16x512xf32>
    %147 = arith.truncf %146 : vector<16x512xf32> to vector<16x512xbf16>
    %c0_69 = arith.constant 0 : index
    %c8 = arith.constant 8 : index
    %c0_70 = arith.constant 0 : index
    %c0_71 = arith.constant 0 : index
    %148 = vector.load %arg4[%c0_69, %c8, %c0_70, %c0_71] : memref<1x9x32x16xbf16, #tpu.memory_space<vmem>>, vector<1x1x32x16xbf16>
    %149 = vector.shape_cast %148 : vector<1x1x32x16xbf16> to vector<32x16xbf16>
    %cst_72 = arith.constant dense<0.000000e+00> : vector<32x512xf32>
    %150 = tpu.matmul %149, %147, %cst_72 {dimension_numbers = #tpu.dot_dimension_numbers<[1], [0], [0], [1], [0, 0, 1, 1], [], []>} : vector<32x16xbf16>, vector<16x512xbf16>, vector<32x512xf32> -> vector<32x512xf32>
    %151 = arith.addf %139, %150 : vector<32x512xf32>
    %152 = arith.addf %140, %144 : vector<16x512xf32>
    %153 = vector.extract_strided_slice %151 {offsets = [0, 0], sizes = [16, 512], strides = [1, 1]} : vector<32x512xf32> to vector<16x512xf32>
    %154 = vector.extract_strided_slice %151 {offsets = [16, 0], sizes = [16, 512], strides = [1, 1]} : vector<32x512xf32> to vector<16x512xf32>
    %155 = vector.broadcast %4 : f32 to vector<16x512xf32>
    %156 = arith.mulf %155, %46 : vector<16x512xf32>
    %cst_73 = arith.constant dense<0.000000e+00> : vector<16xf32>
    %157 = vector.multi_reduction <add>, %153, %cst_73 [1] : vector<16x512xf32> to vector<16xf32>
    %158 = vector.shape_cast %157 : vector<16xf32> to vector<16x1xf32>
    %cst_74 = arith.constant 5.120000e+02 : f32
    %159 = vector.broadcast %cst_74 : f32 to vector<16x1xf32>
    %160 = arith.divf %158, %159 : vector<16x1xf32>
    %161 = vector.broadcast %160 : vector<16x1xf32> to vector<16x512xf32>
    %162 = arith.subf %153, %161 : vector<16x512xf32>
    %163 = arith.mulf %162, %162 : vector<16x512xf32>
    %cst_75 = arith.constant dense<0.000000e+00> : vector<16xf32>
    %164 = vector.multi_reduction <add>, %163, %cst_75 [1] : vector<16x512xf32> to vector<16xf32>
    %165 = vector.shape_cast %164 : vector<16xf32> to vector<16x1xf32>
    %cst_76 = arith.constant 5.120000e+02 : f32
    %166 = vector.broadcast %cst_76 : f32 to vector<16x1xf32>
    %167 = arith.divf %165, %166 : vector<16x1xf32>
    %cst_77 = arith.constant 9.99999974E-6 : f32
    %168 = vector.broadcast %cst_77 : f32 to vector<16x1xf32>
    %169 = arith.addf %167, %168 : vector<16x1xf32>
    %170 = math.rsqrt %169 : vector<16x1xf32>
    %171 = vector.broadcast %14 : f32 to vector<16x1xf32>
    %172 = arith.mulf %171, %170 : vector<16x1xf32>
    %173 = vector.broadcast %172 : vector<16x1xf32> to vector<16x512xf32>
    %174 = arith.mulf %162, %173 : vector<16x512xf32>
    %175 = arith.addf %156, %174 : vector<16x512xf32>
    %cst_78 = arith.constant dense<0.000000e+00> : vector<16xf32>
    %176 = vector.multi_reduction <add>, %154, %cst_78 [1] : vector<16x512xf32> to vector<16xf32>
    %177 = vector.shape_cast %176 : vector<16xf32> to vector<16x1xf32>
    %cst_79 = arith.constant 5.120000e+02 : f32
    %178 = vector.broadcast %cst_79 : f32 to vector<16x1xf32>
    %179 = arith.divf %177, %178 : vector<16x1xf32>
    %180 = vector.broadcast %179 : vector<16x1xf32> to vector<16x512xf32>
    %181 = arith.subf %154, %180 : vector<16x512xf32>
    %182 = arith.mulf %181, %181 : vector<16x512xf32>
    %cst_80 = arith.constant dense<0.000000e+00> : vector<16xf32>
    %183 = vector.multi_reduction <add>, %182, %cst_80 [1] : vector<16x512xf32> to vector<16xf32>
    %184 = vector.shape_cast %183 : vector<16xf32> to vector<16x1xf32>
    %cst_81 = arith.constant 5.120000e+02 : f32
    %185 = vector.broadcast %cst_81 : f32 to vector<16x1xf32>
    %186 = arith.divf %184, %185 : vector<16x1xf32>
    %cst_82 = arith.constant 9.99999974E-6 : f32
    %187 = vector.broadcast %cst_82 : f32 to vector<16x1xf32>
    %188 = arith.addf %186, %187 : vector<16x1xf32>
    %189 = math.rsqrt %188 : vector<16x1xf32>
    %190 = vector.broadcast %9 : f32 to vector<16x1xf32>
    %191 = arith.mulf %190, %189 : vector<16x1xf32>
    %192 = vector.broadcast %191 : vector<16x1xf32> to vector<16x512xf32>
    %193 = arith.mulf %181, %192 : vector<16x512xf32>
    %194 = arith.addf %175, %193 : vector<16x512xf32>
    %195 = vector.broadcast %45 : vector<1x512xf32> to vector<16x512xf32>
    %196 = arith.mulf %152, %195 : vector<16x512xf32>
    %197 = arith.addf %194, %196 : vector<16x512xf32>
    %c0_83 = arith.constant 0 : index
    %c0_84 = arith.constant 0 : index
    %198 = vector.load %arg5[%c0_83, %c0_84] : memref<16x512xf32, #tpu.memory_space<vmem>>, vector<16x512xf32>
    tpu.vector_store %arg5[%c0_83, %c0_84], %197 {strides = array<i32>} : memref<16x512xf32, #tpu.memory_space<vmem>>, vector<16x512xf32>,
    return
  }
  func.func @transform_0(%arg0: i32) -> i32 {
    %c0_i32 = arith.constant 0 : i32
    %c0_i32_0 = arith.constant 0 : i32
    return %c0_i32 : i32
  }
  func.func @transform_1(%arg0: i32) -> (i32, i32) {
    %c0_i32 = arith.constant 0 : i32
    %c0_i32_0 = arith.constant 0 : i32
    %c0_i32_1 = arith.constant 0 : i32
    return %c0_i32, %c0_i32_0 : i32, i32
  }
  func.func @transform_2(%arg0: i32) -> (i32, i32) {
    %c0_i32 = arith.constant 0 : i32
    %c0_i32_0 = arith.constant 0 : i32
    %c0_i32_1 = arith.constant 0 : i32
    return %c0_i32, %c0_i32_0 : i32, i32
  }
  func.func @transform_3(%arg0: i32) -> (i32, i32, i32, i32) {
    %c0_i32 = arith.constant 0 : i32
    %c0_i32_0 = arith.constant 0 : i32
    %c0_i32_1 = arith.constant 0 : i32
    %c0_i32_2 = arith.constant 0 : i32
    return %arg0, %c0_i32, %c0_i32_0, %c0_i32_1 : i32, i32, i32, i32
  }
  func.func @transform_4(%arg0: i32) -> (i32, i32) {
    %c0_i32 = arith.constant 0 : i32
    %c0_i32_0 = arith.constant 0 : i32
    return %arg0, %c0_i32 : i32, i32
  }
}

</mosaic_0001>

<bundles_post_ra>
// kernel: tpu_custom_call.1
= control target key start
LH: loop header
LB: loop body
LE: loop exit
PB: predicated region body
PF: predicated region fallthrough
CT: control target
= control target key end

     0   :  { %9 = vsyncpa [#allocation4], 0  ;;  %s3356_s0 = inlined_call_operand.vmem [shape: f32[5], index: 0, kind: input, shape index: {}]   ;;  %s3357_s1 = inlined_call_operand.vmem [shape: f32[16,512], index: 1, kind: input, shape index: {}]   ;;  %s3358_s2 = inlined_call_operand.vmem [shape: f32[2,512], index: 2, kind: input, shape index: {}]   ;;  %s3359_s3 = inlined_call_operand.vmem [shape: bf16[1,9,32,16], index: 3, kind: input, shape index: {}]   ;;  %s3360_s4 = inlined_call_operand.hbm [shape: f32[16,512], index: 4, kind: output, shape index: {}]  }
   0x1   :  { %10 = vsyncpa [#allocation3], 0  ;;  %s17_s17 = sshll.u32 %s3356_s0, 4  ;;  %s18_s17 = int_to_ptr.vmem [resolvable:$true] %s17_s17 }
   0x2   :  { %s2435_s18 = scalar_lea.vmem %s18_s17, 16  ;;  %p2440_p1 = scmp.lt.s32.totalorder %s18_s17, %s18_s17 }
   0x3   :  { %p2436_p0 = scmp.ne.s32.totalorder %s18_s17, %s2435_s18  ;;  %p2441_p2 = scmp.lt.s32.totalorder %s2435_s18, %s2435_s18 }
   0x5   :  { %p2442_p3 = por %p2441_p2, %p2440_p1 }
   0x7   :  { %p2443_p4 = pnand %p2442_p3, %p2436_p0 }
   0x9   :  { %2446 = shalt.err (!%p2443_p4)
}
   0xa   :  { %s2473_s19 = smov [#allocation2]  }
   0xb   :  { %20 = dma.vmem_to_smem %s18_s17, 16, %s2473_s19, [#allocation4]  }
   0xc   :  { %2469 = dma.done.wait [#allocation4], 16  }
   0xd   :  { %2470 = vsyncadd [#allocation4], 4294967280 }
   0xe   :  { %30 = sfence }
   0xf   :  { %v2518_v0 = vld [vmem:[%s3357_s1 + $0x8] sm:$0xff]  ;;  %v2523_v1 = vld [vmem:[%s3357_s1] sm:$0xff]  ;;  %s2474_s23 = smov 16   ;;  %v2542_v4 = vld [vmem:[%s3357_s1 + $0x38] sm:$0xff]  ;;  %v2475_v6 = vmov 0   ;;  %s2476_s10 = smov 17   ;;  %v104_v15 = vlaneseq }
  0x10   :  { %172 = vrot.lane.b32.xlu1 %v2518_v0, %s2474_s23  ;;  %168 = vrot.lane.b32.xlu0 %v2523_v1, %s2474_s23  ;;  %v2530_v2 = vld [vmem:[%s3357_s1 + $0x28] sm:$0xff]  ;;  %v2535_v3 = vld [vmem:[%s3357_s1 + $0x20] sm:$0xff]  ;;  %s2477_s11 = smov 15   ;;  %s2478_s12 = smov 1   ;;  %v2480_v10 = vmov 0.0   ;;  %vm249_vm4 = vcmask 130048  }
  0x11   :  { %v2547_v5 = vld [vmem:[%s3357_s1 + $0x18] sm:$0xff]  ;;  %288 = vmatprep.mubr.bf16.mxu0 %v2475_v6  ;;  %341 = vmatprep.mubr.bf16.mxu1 %v2475_v6  ;;  %v2554_v7 = vld [vmem:[%s3357_s1 + $0x30] sm:$0xff]  ;;  %s2479_s13 = smov 127   ;;  %v56_v9 = vld [vmem:[%s3358_s2] ss:$2 sm:$0xf] }
  0x12   :  { %v2559_v8 = vld [vmem:[%s3357_s1 + $0x10] sm:$0xff]  ;;  %vm62_vm0 = vcmp.le.f32.partialorder %v56_v9, 14.0  ;;  %s2481_s16 = smov 113   ;;  %vm59_vm1 = vcmp.ge.f32.partialorder %v56_v9, 1.0  ;;  %s2482_s17 = smov 112   ;;  %v117_v16 = vshrl.u32 %v104_v15, 7 }
  0x13   :  { %v2597_v11 = vsel %vm62_vm0, 1.0, %v2480_v10  ;;  %v2608_v12 = vsel %vm59_vm1, 1.0, %v2480_v10  ;;  %v2626_v17 = vand.u32 127, %v104_v15  ;;  %s2483_s18 = smov 111   ;;  %v2399_v61 = vld [vmem:[%s3359_s3 + $0x10] sm:$0xff]   ;;  %s3274_s29 = sld [smem:[#allocation2 + $0x1]] }
  0x14   :  { %174 = vrot.lane.b32.xlu1 %v2530_v2, %s2474_s23  ;;  %170 = vrot.lane.b32.xlu0 %v2535_v3, %s2474_s23  ;;  %v71_v13 = vadd.f32 1.0, %v2608_v12  ;;  %v2628_v18 = vsub.s32 1, %v117_v16  ;;  %v2643_v23 = vsub.s32 0, %v117_v16  ;;  %v2648_v24 = vld [vmem:[%s3358_s2 + $0x1] ss:$2 sm:$0xf] }
  0x15   :  { %vm184_vm2 = vcmp.lt.s32.totalorder %v2626_v17, 16  ;;  %v2652_v28 = vsub.s32 2, %v117_v16  ;;  %v2656_v30 = vsub.s32 3, %v117_v16  ;;  %vm65_vm3 = vcmp.ge.f32.partialorder %v2648_v24, 1.0  ;;  %s3276_s30 = sld [smem:[#allocation2 + $0x2]] }
  0x16   :  { %v2614_v14 = vadd.f32 %v2597_v11, %v71_v13  ;;  %v201_v21 = vrot.slane %v2608_v12, %v2628_v18  ;;  %v197_v32 = vrot.slane %v2608_v12, %v2643_v23  ;;  %v2675_v41 = vsel %vm65_vm3, 1.0, %v2480_v10 }
  0x17   :  { %v205_v35 = vrot.slane %v2608_v12, %v2652_v28  ;;  %v209_v40 = vrot.slane %v2608_v12, %v2656_v30  ;;  %v87_v49 = vmul.f32 %v2675_v41, %v2608_v12  ;;  %vm106_vm5 = vcmp.lt.s32.totalorder %v2626_v17, 17 }
  0x18   :  { %182 = vrot.lane.b32.xlu1 %v2542_v4, %s2474_s23  ;;  %180 = vrot.lane.b32.xlu0 %v2547_v5, %s2474_s23  ;;  %vm68_vm6 = vcmp.le.f32.partialorder %v2648_v24, 14.0  ;;  %vm509_vm7 = vcmp.lt.s32.totalorder %v2626_v17, 15  ;;  %vm726_vm8 = vcmp.lt.s32.totalorder %v2626_v17, 1  ;;  %vm1106_vm9 = vcmp.lt.s32.totalorder %v2626_v17, 127 }
  0x19   :  { %v123_v15 = vrot.slane %v87_v49, %v2628_v18  ;;  %vm1324_vm10 = vcmp.lt.s32.totalorder %v2626_v17, 113  ;;  %vm1541_vm11 = vcmp.lt.s32.totalorder %v2626_v17, 112  ;;  %vm1759_vm12 = vcmp.lt.s32.totalorder %v2626_v17, 111  ;;  %p33_p10 = scmp.gt.f32.partialorder %s3274_s29, 0.0  ;;  %p34_p11 = scmp.le.f32.partialorder %s3274_s29, 1.0 }
  0x1b   :  { %p3280_p13 = pnand %p34_p11, %p33_p10  ;;  %p39_p0 = scmp.gt.f32.partialorder %s3276_s30, 0.0 }
  0x1c   :  { %178 = vrot.lane.b32.xlu1 %v2554_v7, %s2474_s23  ;;  %176 = vrot.lane.b32.xlu0 %v2559_v8, %s2474_s23  ;;  %p40_p1 = scmp.le.f32.partialorder %s3276_s30, 1.0 }
  0x1d   :  { %s3369_s29 = smov (%p3280_p13, %s3274_s29), 0.0 }
  0x1e   :  { %p3289_p2 = pnand %p40_p1, %p39_p0 }
  0x20   :  { %90 = vrot.lane.b32.xlu1 %v2535_v3, %s2476_s10  ;;  %88 = vrot.lane.b32.xlu0 %v2523_v1, %s2476_s10  ;;  %s3371_s30 = smov (%p3289_p2, %s3276_s30), 0.0 }
  0x24   :  { %94 = vrot.lane.b32.xlu1 %v2530_v2, %s2476_s10  ;;  %92 = vrot.lane.b32.xlu0 %v2518_v0, %s2476_s10 }
  0x28   :  { %102 = vrot.lane.b32.xlu1 %v2542_v4, %s2476_s10  ;;  %100 = vrot.lane.b32.xlu0 %v2547_v5, %s2476_s10 }
  0x2c   :  { %98 = vrot.lane.b32.xlu1 %v2554_v7, %s2476_s10  ;;  %96 = vrot.lane.b32.xlu0 %v2559_v8, %s2476_s10 }
  0x30   :  { %495 = vrot.lane.b32.xlu1 %v2535_v3, %s2477_s11  ;;  %493 = vrot.lane.b32.xlu0 %v2523_v1, %s2477_s11 }
  0x34   :  { %499 = vrot.lane.b32.xlu1 %v2530_v2, %s2477_s11  ;;  %497 = vrot.lane.b32.xlu0 %v2518_v0, %s2477_s11 }
  0x38   :  { %507 = vrot.lane.b32.xlu1 %v2542_v4, %s2477_s11  ;;  %505 = vrot.lane.b32.xlu0 %v2547_v5, %s2477_s11 }
  0x3c   :  { %503 = vrot.lane.b32.xlu1 %v2554_v7, %s2477_s11  ;;  %501 = vrot.lane.b32.xlu0 %v2559_v8, %s2477_s11  ;;  %s2983_s11 = sld [smem:[#allocation2 + $0x4]] }
  0x40   :  { %712 = vrot.lane.b32.xlu1 %v2535_v3, %s2478_s12  ;;  %710 = vrot.lane.b32.xlu0 %v2523_v1, %s2478_s12 }
  0x42   :  { %p51_p5 = scmp.gt.f32.partialorder %s2983_s11, 0.0  ;;  %p52_p6 = scmp.le.f32.partialorder %s2983_s11, 1.0 }
  0x44   :  { %716 = vrot.lane.b32.xlu1 %v2530_v2, %s2478_s12  ;;  %714 = vrot.lane.b32.xlu0 %v2518_v0, %s2478_s12  ;;  %p3049_p7 = pnand %p52_p6, %p51_p5 }
  0x46   :  { %s3365_s11 = smov (%p3049_p7, %s2983_s11), 0.0 }
  0x48   :  { %724 = vrot.lane.b32.xlu1 %v2542_v4, %s2478_s12  ;;  %722 = vrot.lane.b32.xlu0 %v2547_v5, %s2478_s12 }
  0x4c   :  { %720 = vrot.lane.b32.xlu1 %v2554_v7, %s2478_s12  ;;  %718 = vrot.lane.b32.xlu0 %v2559_v8, %s2478_s12 }
  0x50   :  { %1096 = vrot.lane.b32.xlu1 %v2530_v2, %s2479_s13  ;;  %1094 = vrot.lane.b32.xlu0 %v2518_v0, %s2479_s13 }
  0x54   :  { %1100 = vrot.lane.b32.xlu1 %v2554_v7, %s2479_s13  ;;  %1098 = vrot.lane.b32.xlu0 %v2559_v8, %s2479_s13 }
  0x58   :  { %1092 = vrot.lane.b32.xlu1 %v2535_v3, %s2479_s13  ;;  %1090 = vrot.lane.b32.xlu0 %v2523_v1, %s2479_s13 }
  0x5c   :  { %1104 = vrot.lane.b32.xlu1 %v2542_v4, %s2479_s13  ;;  %1102 = vrot.lane.b32.xlu0 %v2547_v5, %s2479_s13 }
  0x60   :  { %1314 = vrot.lane.b32.xlu1 %v2530_v2, %s2481_s16  ;;  %1312 = vrot.lane.b32.xlu0 %v2518_v0, %s2481_s16 }
  0x64   :  { %1318 = vrot.lane.b32.xlu1 %v2554_v7, %s2481_s16  ;;  %1316 = vrot.lane.b32.xlu0 %v2559_v8, %s2481_s16 }
  0x68   :  { %1310 = vrot.lane.b32.xlu1 %v2535_v3, %s2481_s16  ;;  %1308 = vrot.lane.b32.xlu0 %v2523_v1, %s2481_s16 }
  0x6c   :  { %1322 = vrot.lane.b32.xlu1 %v2542_v4, %s2481_s16  ;;  %1320 = vrot.lane.b32.xlu0 %v2547_v5, %s2481_s16 }
  0x70   :  { %1531 = vrot.lane.b32.xlu1 %v2530_v2, %s2482_s17  ;;  %1529 = vrot.lane.b32.xlu0 %v2518_v0, %s2482_s17 }
  0x74   :  { %1535 = vrot.lane.b32.xlu1 %v2554_v7, %s2482_s17  ;;  %1533 = vrot.lane.b32.xlu0 %v2559_v8, %s2482_s17 }
  0x78   :  { %1527 = vrot.lane.b32.xlu1 %v2535_v3, %s2482_s17  ;;  %1525 = vrot.lane.b32.xlu0 %v2523_v1, %s2482_s17 }
  0x7c   :  { %1539 = vrot.lane.b32.xlu1 %v2542_v4, %s2482_s17  ;;  %1537 = vrot.lane.b32.xlu0 %v2547_v5, %s2482_s17 }
  0x80   :  { %1749 = vrot.lane.b32.xlu1 %v2530_v2, %s2483_s18  ;;  %1747 = vrot.lane.b32.xlu0 %v2518_v0, %s2483_s18 }
  0x82   :  { %v173_v19 = vpop.permute.xlu1 %172  ;;  %v169_v20 = vpop.permute.xlu0 %168 }
  0x83   :  { %v189_v22 = vsel %vm184_vm2, %v169_v20, %v173_v19 }
  0x84   :  { %1753 = vrot.lane.b32.xlu1 %v2554_v7, %s2483_s18  ;;  %1751 = vrot.lane.b32.xlu0 %v2559_v8, %s2483_s18  ;;  %v2650_v25 = vmul.f32 %v201_v21, %v189_v22 }
  0x86   :  { %v175_v26 = vpop.permute.xlu1 %174  ;;  %v171_v27 = vpop.permute.xlu0 %170  ;;  %v223_v36 = vmax.f32 %v2650_v25, 0.0 }
  0x87   :  { %v190_v29 = vsel %vm184_vm2, %v171_v27, %v175_v26 }
  0x88   :  { %v219_v31 = vmul.f32 %v201_v21, %v190_v29  ;;  %1745 = vrot.lane.b32.xlu1 %v2535_v3, %s2483_s18  ;;  %1743 = vrot.lane.b32.xlu0 %v2523_v1, %s2483_s18 }
  0x8a   :  { %v183_v33 = vpop.permute.xlu1 %182  ;;  %v181_v34 = vpop.permute.xlu0 %180  ;;  %v227_v37 = vmax.f32 %v219_v31, 0.0 }
  0x8b   :  { %v192_v38 = vsel %vm184_vm2, %v183_v33, %v171_v27  ;;  %v191_v39 = vsel %vm184_vm2, %v181_v34, %v169_v20 }
  0x8c   :  { %v2677_v42 = vmul.f32 %v197_v32, %v192_v38  ;;  %v2679_v43 = vmul.f32 %v197_v32, %v191_v39  ;;  %1757 = vrot.lane.b32.xlu1 %v2542_v4, %s2483_s18  ;;  %1755 = vrot.lane.b32.xlu0 %v2547_v5, %s2483_s18  ;;  %v231_v44 = vpack.c.bf16 %v227_v37, %v223_v36  ;;  %v2400_v39 = vld [vmem:[%s3359_s3 + $0x18] sm:$0xff]  }
  0x8d   :  { %v119_v32 = vrot.slane %v87_v49, %v2643_v23 }
  0x8e   :  { %v179_v45 = vpop.permute.xlu1 %178  ;;  %v177_v46 = vpop.permute.xlu0 %176  ;;  %256 = vmatprep.subr.bf16.mxu0 %v231_v44  ;;  %v222_v47 = vmax.f32 %v2679_v43, 0.0  ;;  %v226_v48 = vmax.f32 %v2677_v42, 0.0 }
  0x8f   :  { %v186_v50 = vsel %vm184_vm2, %v179_v45, %v183_v33  ;;  %v188_v51 = vsel %vm184_vm2, %v175_v26, %v179_v45  ;;  %v185_v52 = vsel %vm184_vm2, %v177_v46, %v181_v34  ;;  %v187_v53 = vsel %vm184_vm2, %v173_v19, %v177_v46 }
  0x90   :  { %v2697_v54 = vmul.f32 %v205_v35, %v188_v51  ;;  %v2699_v55 = vmul.f32 %v209_v40, %v186_v50  ;;  %v2701_v56 = vmul.f32 %v205_v35, %v187_v53  ;;  %v2703_v57 = vmul.f32 %v209_v40, %v185_v52 }
  0x91   :  { %v230_v58 = vpack.c.bf16 %v226_v48, %v222_v47  ;;  %v2723_v33 = vsel %vm68_vm6, 1.0, %v2480_v10  ;;  %v131_v45 = vrot.slane %v87_v49, %v2656_v30 }
  0x92   :  { %v91_v59 = vpop.permute.xlu1 %90  ;;  %v89_v60 = vpop.permute.xlu0 %88  ;;  %v225_v62 = vmax.f32 %v2703_v57, 0.0  ;;  %v229_v63 = vmax.f32 %v2699_v55, 0.0  ;;  %v224_v9 = vmax.f32 %v2701_v56, 0.0  ;;  %v228_v13 = vmax.f32 %v2697_v54, 0.0 }
  0x93   :  { %257 = vmatpush1.bf16.msra.mxu0 %v230_v58  ;;  %v492_v47 = vmul.f32 %v2723_v33, %v2608_v12 }
  0x94   :  { %v233_v16 = vpack.c.bf16 %v229_v63, %v225_v62  ;;  %v232_v19 = vpack.c.bf16 %v228_v13, %v224_v9 }
  0x96   :  { %2177 = vmatmul.mubr.msk.bf16.vlgmr.msra.gmra.mrb[0].mxu0 %vm249_vm4, %v2399_v61  ;;  %v95_v20 = vpop.permute.xlu1 %94  ;;  %v93_v21 = vpop.permute.xlu0 %92  ;;  %309 = vmatprep.subr.bf16.mxu1 %v233_v16 }
  0x97   :  { %v112_v22 = vsel %vm106_vm5, %v91_v59, %v95_v20  ;;  %v111_v26 = vsel %vm106_vm5, %v89_v60, %v93_v21  ;;  %310 = vmatpush1.bf16.msra.mxu1 %v232_v19  ;;  %298 = vmatprep.mubr.bf16.mxu0 %v2475_v6 }
  0x98   :  { %v141_v27 = vmul.f32 %v123_v15, %v112_v22  ;;  %v137_v29 = vmul.f32 %v123_v15, %v111_v26 }
  0x9a   :  { %v149_v34 = vmax.f32 %v141_v27, 0.0  ;;  %v2725_v35 = vadd.f32 %v219_v31, %v141_v27  ;;  %v145_v24 = vmax.f32 %v137_v29, 0.0  ;;  %v2728_v36 = vadd.f32 %v2650_v25, %v137_v29  ;;  %v103_v37 = vpop.permute.xlu1 %102  ;;  %v101_v38 = vpop.permute.xlu0 %100  ;;  %2179 = vmatmul.mubr.msk.bf16.vlgmr.msra.gmra.mrb[0].mxu1 %vm249_vm4, %v2399_v61 }
  0x9b   :  { %v114_v40 = vsel %vm106_vm5, %v103_v37, %v91_v59  ;;  %v113_v10 = vsel %vm106_vm5, %v101_v38, %v89_v60  ;;  %v127_v31 = vrot.slane %v87_v49, %v2652_v28  ;;  %351 = vmatprep.mubr.bf16.mxu1 %v2475_v6 }
  0x9c   :  { %v140_v25 = vmul.f32 %v119_v32, %v114_v40  ;;  %v136_v44 = vmul.f32 %v119_v32, %v113_v10  ;;  %v153_v46 = vpack.c.bf16 %v149_v34, %v145_v24 }
  0x9e   :  { %v148_v48 = vmax.f32 %v140_v25, 0.0  ;;  %v2744_v50 = vadd.f32 %v2677_v42, %v140_v25  ;;  %v144_v51 = vmax.f32 %v136_v44, 0.0  ;;  %v2747_v52 = vadd.f32 %v2679_v43, %v136_v44  ;;  %2178 = vmatmul.mubr.msk.bf16.gmra.mrb[4].mxu0 %vm249_vm4, %v2400_v39  ;;  %v99_v53 = vpop.permute.xlu1 %98  ;;  %v97_v58 = vpop.permute.xlu0 %96  ;;  %378 = vmatprep.subr.bf16.mxu0 %v153_v46  ;;  %v2402_v46 = vld [vmem:[%s3359_s3 + $0x8] sm:$0xff]  }
  0x9f   :  { %v108_v49 = vsel %vm106_vm5, %v99_v53, %v103_v37  ;;  %v110_v59 = vsel %vm106_vm5, %v95_v20, %v99_v53  ;;  %v107_v12 = vsel %vm106_vm5, %v97_v58, %v101_v38  ;;  %v109_v42 = vsel %vm106_vm5, %v93_v21, %v97_v58  ;;  %410 = vmatprep.mubr.bf16.mxu0 %v2475_v6  ;;  %v2401_v21 = vld [vmem:[%s3359_s3] sm:$0xff]  }
  0xa0   :  { %v152_v43 = vpack.c.bf16 %v148_v48, %v144_v51  ;;  %v142_v60 = vmul.f32 %v127_v31, %v110_v59  ;;  %v143_v61 = vmul.f32 %v131_v45, %v108_v49  ;;  %v138_v62 = vmul.f32 %v127_v31, %v109_v42 }
  0xa1   :  { %v139_v63 = vmul.f32 %v131_v45, %v107_v12 }
  0xa2   :  { %v150_v9 = vmax.f32 %v142_v60, 0.0  ;;  %v151_v13 = vmax.f32 %v143_v61, 0.0  ;;  %v2760_v15 = vadd.f32 %v2697_v54, %v142_v60  ;;  %v2763_v16 = vadd.f32 %v2699_v55, %v143_v61  ;;  %v496_v19 = vpop.permute.xlu1 %495  ;;  %v494_v20 = vpop.permute.xlu0 %493  ;;  %2180 = vmatmul.mubr.msk.bf16.gmra.mrb[4].mxu1 %vm249_vm4, %v2400_v39  ;;  %379 = vmatpush1.bf16.msra.mxu0 %v152_v43 }
  0xa3   :  { %v146_v22 = vmax.f32 %v138_v62, 0.0  ;;  %v147_v26 = vmax.f32 %v139_v63, 0.0  ;;  %v486_v27 = vadd.f32 %v2701_v56, %v138_v62  ;;  %v487_v29 = vadd.f32 %v2703_v57, %v139_v63  ;;  %463 = vmatprep.mubr.bf16.mxu1 %v2475_v6 }
  0xa4   :  { %v526_v54 = vrot.slane %v492_v47, %v2628_v18  ;;  %v522_v39 = vrot.slane %v492_v47, %v2643_v23 }
  0xa5   :  { %v154_v55 = vpack.c.bf16 %v150_v9, %v146_v22  ;;  %v155_v32 = vpack.c.bf16 %v151_v13, %v147_v26 }
  0xa6   :  { %2183 = vmatmul.mubr.msk.bf16.vlgmr.msra.gmra.mrb[0].mxu0 %vm249_vm4, %v2401_v21  ;;  %v500_v34 = vpop.permute.xlu1 %499  ;;  %v498_v24 = vpop.permute.xlu0 %497 }
  0xa7   :  { %v515_v37 = vsel %vm509_vm7, %v496_v19, %v500_v34  ;;  %v514_v56 = vsel %vm509_vm7, %v494_v20, %v498_v24  ;;  %431 = vmatprep.subr.bf16.mxu1 %v155_v32  ;;  %420 = vmatprep.mubr.bf16.mxu0 %v2475_v6 }
  0xa8   :  { %v544_v57 = vmul.f32 %v526_v54, %v515_v37  ;;  %v540_v38 = vmul.f32 %v526_v54, %v514_v56  ;;  %432 = vmatpush1.bf16.msra.mxu1 %v154_v55 }
  0xaa   :  { %v552_v40 = vmax.f32 %v544_v57, 0.0  ;;  %v2782_v10 = vadd.f32 %v544_v57, %v2725_v35  ;;  %v548_v31 = vmax.f32 %v540_v38, 0.0  ;;  %v2785_v25 = vadd.f32 %v540_v38, %v2728_v36  ;;  %v508_v44 = vpop.permute.xlu1 %507  ;;  %v506_v45 = vpop.permute.xlu0 %505 }
  0xab   :  { %v517_v48 = vsel %vm509_vm7, %v508_v44, %v496_v19  ;;  %v516_v51 = vsel %vm509_vm7, %v506_v45, %v494_v20  ;;  %2185 = vmatmul.mubr.msk.bf16.vlgmr.msra.gmra.mrb[0].mxu1 %vm249_vm4, %v2401_v21  ;;  %v530_v35 = vrot.slane %v492_v47, %v2652_v28  ;;  %v534_v36 = vrot.slane %v492_v47, %v2656_v30 }
  0xac   :  { %v543_v53 = vmul.f32 %v522_v39, %v517_v48  ;;  %v539_v58 = vmul.f32 %v522_v39, %v516_v51  ;;  %v556_v49 = vpack.c.bf16 %v552_v40, %v548_v31  ;;  %473 = vmatprep.mubr.bf16.mxu1 %v2475_v6  ;;  %v932_v48 = vmax.f32 %v2530_v2, 0.0 }
  0xae   :  { %v551_v59 = vmax.f32 %v543_v53, 0.0  ;;  %v2799_v12 = vadd.f32 %v543_v53, %v2744_v50  ;;  %v547_v42 = vmax.f32 %v539_v58, 0.0  ;;  %v2802_v43 = vadd.f32 %v539_v58, %v2747_v52  ;;  %2184 = vmatmul.mubr.msk.bf16.gmra.mrb[4].mxu0 %vm249_vm4, %v2402_v46  ;;  %v504_v60 = vpop.permute.xlu1 %503  ;;  %v502_v61 = vpop.permute.xlu0 %501  ;;  %580 = vmatprep.subr.bf16.mxu0 %v556_v49 }
  0xaf   :  { %v511_v62 = vsel %vm509_vm7, %v504_v60, %v508_v44  ;;  %v513_v47 = vsel %vm509_vm7, %v500_v34, %v504_v60  ;;  %v510_v63 = vsel %vm509_vm7, %v502_v61, %v506_v45  ;;  %v512_v50 = vsel %vm509_vm7, %v498_v24, %v502_v61  ;;  %612 = vmatprep.mubr.bf16.mxu0 %v2475_v6  ;;  %v2403_v34 = vld [vmem:[%s3359_s3 + $0x20] sm:$0xff]  }
  0xb0   :  { %v555_v52 = vpack.c.bf16 %v551_v59, %v547_v42  ;;  %v545_v9 = vmul.f32 %v530_v35, %v513_v47  ;;  %v546_v13 = vmul.f32 %v534_v36, %v511_v62  ;;  %v541_v19 = vmul.f32 %v530_v35, %v512_v50  ;;  %v2404_v59 = vld [vmem:[%s3359_s3 + $0x28] sm:$0xff]  }
  0xb1   :  { %v542_v20 = vmul.f32 %v534_v36, %v510_v63  ;;  %v739_v45 = vrot.slane %v2675_v41, %v2643_v23  ;;  %v751_v62 = vrot.slane %v2675_v41, %v2656_v30  ;;  %v927_v50 = vmax.f32 %v2523_v1, 0.0 }
  0xb2   :  { %v553_v21 = vmax.f32 %v545_v9, 0.0  ;;  %v554_v22 = vmax.f32 %v546_v13, 0.0  ;;  %v2815_v26 = vadd.f32 %v545_v9, %v2760_v15  ;;  %v2818_v54 = vadd.f32 %v546_v13, %v2763_v16  ;;  %v713_v55 = vpop.permute.xlu1 %712  ;;  %v711_v32 = vpop.permute.xlu0 %710  ;;  %581 = vmatpush1.bf16.msra.mxu0 %v555_v52 }
  0xb3   :  { %v549_v24 = vmax.f32 %v541_v19, 0.0  ;;  %v550_v37 = vmax.f32 %v542_v20, 0.0  ;;  %v2823_v56 = vadd.f32 %v541_v19, %v486_v27  ;;  %v2825_v57 = vadd.f32 %v542_v20, %v487_v29  ;;  %2186 = vmatmul.mubr.msk.bf16.gmra.mrb[4].mxu1 %vm249_vm4, %v2402_v46 }
  0xb4   :  { %v743_v15 = vrot.slane %v2675_v41, %v2628_v18  ;;  %665 = vmatprep.mubr.bf16.mxu1 %v2475_v6  ;;  %v928_v46 = vmax.f32 %v2518_v0, 0.0  ;;  %v931_v52 = vmax.f32 %v2535_v3, 0.0  ;;  %v930_v9 = vmax.f32 %v2547_v5, 0.0 }
  0xb5   :  { %v557_v16 = vpack.c.bf16 %v553_v21, %v549_v24  ;;  %v558_v38 = vpack.c.bf16 %v554_v22, %v550_v37 }
  0xb6   :  { %2193 = vmatmul.mubr.msk.bf16.vlgmr.msra.gmra.mrb[0].mxu0 %vm249_vm4, %v2403_v34  ;;  %v717_v39 = vpop.permute.xlu1 %716  ;;  %v715_v40 = vpop.permute.xlu0 %714  ;;  %v936_v63 = vpack.c.bf16 %v932_v48, %v928_v46 }
  0xb7   :  { %v732_v27 = vsel %vm726_vm8, %v713_v55, %v717_v39  ;;  %v731_v29 = vsel %vm726_vm8, %v711_v32, %v715_v40  ;;  %633 = vmatprep.subr.bf16.mxu1 %v558_v38  ;;  %622 = vmatprep.mubr.bf16.mxu0 %v2475_v6 }
  0xb8   :  { %v761_v31 = vmul.f32 %v743_v15, %v732_v27  ;;  %v757_v44 = vmul.f32 %v743_v15, %v731_v29  ;;  %634 = vmatpush1.bf16.msra.mxu1 %v557_v16  ;;  %v934_v27 = vmax.f32 %v2542_v4, 0.0  ;;  %v929_v29 = vmax.f32 %v2559_v8, 0.0 }
  0xba   :  { %v769_v51 = vmax.f32 %v761_v31, 0.0  ;;  %v2843_v35 = vadd.f32 %v761_v31, %v2782_v10  ;;  %v765_v53 = vmax.f32 %v757_v44, 0.0  ;;  %v2846_v58 = vadd.f32 %v757_v44, %v2785_v25  ;;  %v725_v36 = vpop.permute.xlu1 %724  ;;  %v723_v49 = vpop.permute.xlu0 %722 }
  0xbb   :  { %v734_v42 = vsel %vm726_vm8, %v725_v36, %v713_v55  ;;  %v733_v60 = vsel %vm726_vm8, %v723_v49, %v711_v32  ;;  %2195 = vmatmul.mubr.msk.bf16.vlgmr.msra.gmra.mrb[0].mxu1 %vm249_vm4, %v2403_v34  ;;  %v747_v10 = vrot.slane %v2675_v41, %v2652_v28  ;;  %v933_v31 = vmax.f32 %v2554_v7, 0.0 }
  0xbc   :  { %v760_v61 = vmul.f32 %v739_v45, %v734_v42  ;;  %v756_v25 = vmul.f32 %v739_v45, %v733_v60  ;;  %v773_v47 = vpack.c.bf16 %v769_v51, %v765_v53  ;;  %675 = vmatprep.mubr.bf16.mxu1 %v2475_v6  ;;  %v2405_v51 = vld [vmem:[%s3359_s3 + $0x30] sm:$0xff]  }
  0xbe   :  { %v768_v13 = vmax.f32 %v760_v61, 0.0  ;;  %v2865_v19 = vadd.f32 %v760_v61, %v2799_v12  ;;  %v764_v20 = vmax.f32 %v756_v25, 0.0  ;;  %v2868_v21 = vadd.f32 %v756_v25, %v2802_v43  ;;  %2194 = vmatmul.mubr.msk.bf16.gmra.mrb[4].mxu0 %vm249_vm4, %v2404_v59  ;;  %v721_v22 = vpop.permute.xlu1 %720  ;;  %v719_v55 = vpop.permute.xlu0 %718  ;;  %797 = vmatprep.subr.bf16.mxu0 %v773_v47 }
  0xbf   :  { %v728_v32 = vsel %vm726_vm8, %v721_v22, %v725_v36  ;;  %v730_v34 = vsel %vm726_vm8, %v717_v39, %v721_v22  ;;  %v727_v24 = vsel %vm726_vm8, %v719_v55, %v723_v49  ;;  %v729_v12 = vsel %vm726_vm8, %v715_v40, %v719_v55  ;;  %829 = vmatprep.mubr.bf16.mxu0 %v2475_v6 }
  0xc0   :  { %v772_v43 = vpack.c.bf16 %v768_v13, %v764_v20  ;;  %v762_v37 = vmul.f32 %v747_v10, %v730_v34  ;;  %v763_v15 = vmul.f32 %v751_v62, %v728_v32  ;;  %v758_v16 = vmul.f32 %v747_v10, %v729_v12 }
  0xc1   :  { %v759_v38 = vmul.f32 %v751_v62, %v727_v24  ;;  %v938_v61 = vpack.c.bf16 %v934_v27, %v930_v9  ;;  %v1087_v62 = vadd.f32 %v2843_v35, %v2530_v2  ;;  %v1127_v13 = vrot.slane %v2723_v33, %v2652_v28 }
  0xc2   :  { %v770_v39 = vmax.f32 %v762_v37, 0.0  ;;  %v771_v44 = vmax.f32 %v763_v15, 0.0  ;;  %v925_v45 = vadd.f32 %v762_v37, %v2815_v26  ;;  %v2885_v46 = vadd.f32 %v763_v15, %v2818_v54  ;;  %v1097_v40 = vpop.permute.xlu1 %1096  ;;  %v1095_v48 = vpop.permute.xlu0 %1094  ;;  %798 = vmatpush1.bf16.msra.mxu0 %v772_v43 }
  0xc3   :  { %v766_v53 = vmax.f32 %v758_v16, 0.0  ;;  %v767_v36 = vmax.f32 %v759_v38, 0.0  ;;  %v2891_v49 = vadd.f32 %v758_v16, %v2823_v56  ;;  %v2894_v42 = vadd.f32 %v759_v38, %v2825_v57  ;;  %2196 = vmatmul.mubr.msk.bf16.gmra.mrb[4].mxu1 %vm249_vm4, %v2404_v59  ;;  %960 = vmatprep.subr.bf16.mxu0 %v936_v63 }
  0xc4   :  { %v1123_v26 = vrot.slane %v2723_v33, %v2628_v18  ;;  %882 = vmatprep.mubr.bf16.mxu1 %v2475_v6  ;;  %v935_v54 = vpack.c.bf16 %v931_v52, %v927_v50  ;;  %v1119_v57 = vrot.slane %v2723_v33, %v2643_v23  ;;  %v937_v59 = vpack.c.bf16 %v933_v31, %v929_v29 }
  0xc5   :  { %v774_v60 = vpack.c.bf16 %v770_v39, %v766_v53  ;;  %v775_v10 = vpack.c.bf16 %v771_v44, %v767_v36  ;;  %v1083_v52 = vadd.f32 %v2846_v58, %v2518_v0  ;;  %v1131_v2 = vrot.slane %v2723_v33, %v2656_v30  ;;  %v2406_v0 = vld [vmem:[%s3359_s3 + $0x38] sm:$0xff]  }
  0xc6   :  { %2203 = vmatmul.mubr.msk.bf16.vlgmr.msra.gmra.mrb[0].mxu0 %vm249_vm4, %v2405_v51  ;;  %v1101_v56 = vpop.permute.xlu1 %1100  ;;  %v1099_v25 = vpop.permute.xlu0 %1098  ;;  %v1086_v58 = vadd.f32 %v2865_v19, %v2535_v3  ;;  %v1082_v12 = vadd.f32 %v2868_v21, %v2523_v1  ;;  %v1088_v38 = vadd.f32 %v925_v45, %v2554_v7  ;;  %v2937_v3 = vmul.f32 %v2675_v41, %v2597_v11 }
  0xc7   :  { %v1110_v47 = vsel %vm1106_vm9, %v1097_v40, %v1101_v56  ;;  %v1109_v63 = vsel %vm1106_vm9, %v1095_v48, %v1099_v25  ;;  %850 = vmatprep.subr.bf16.mxu1 %v775_v10  ;;  %839 = vmatprep.mubr.bf16.mxu0 %v2475_v6  ;;  %v1084_v36 = vadd.f32 %v2891_v49, %v2559_v8 }
  0xc8   :  { %v1141_v50 = vmul.f32 %v1123_v26, %v1110_v47  ;;  %v1137_v9 = vmul.f32 %v1123_v26, %v1109_v63  ;;  %851 = vmatpush1.bf16.msra.mxu1 %v774_v60  ;;  %961 = vmatpush1.bf16.msra.mxu0 %v935_v54  ;;  %v1085_v26 = vadd.f32 %v2894_v42, %v2547_v5 }
  0xc9   :  { %1013 = vmatprep.subr.bf16.mxu1 %v938_v61  ;;  %v1341_v42 = vrot.slane %v2937_v3, %v2628_v18 }
  0xca   :  { %v1149_v35 = vmax.f32 %v1141_v50, 0.0  ;;  %v2917_v20 = vadd.f32 %v1141_v50, %v1087_v62  ;;  %v1145_v22 = vmax.f32 %v1137_v9, 0.0  ;;  %v2919_v55 = vadd.f32 %v1137_v9, %v1083_v52  ;;  %v1093_v32 = vpop.permute.xlu1 %1092  ;;  %v1091_v34 = vpop.permute.xlu0 %1090 }
  0xcb   :  { %v1112_v24 = vsel %vm1106_vm9, %v1093_v32, %v1097_v40  ;;  %v1111_v43 = vsel %vm1106_vm9, %v1091_v34, %v1095_v48  ;;  %2205 = vmatmul.mubr.msk.bf16.vlgmr.msra.gmra.mrb[0].mxu1 %vm249_vm4, %v2405_v51  ;;  %v1089_v40 = vadd.f32 %v2885_v46, %v2542_v4  ;;  %v2407_v4 = vld [vmem:[%s3359_s3 + $0x40] sm:$0xff]  }
  0xcc   :  { %v1140_v37 = vmul.f32 %v1119_v57, %v1112_v24  ;;  %v1136_v15 = vmul.f32 %v1119_v57, %v1111_v43  ;;  %892 = vmatprep.mubr.bf16.mxu1 %v2475_v6  ;;  %1014 = vmatpush1.bf16.msra.mxu1 %v937_v59  ;;  %v1153_v16 = vpack.c.bf16 %v1149_v35, %v1145_v22  ;;  %v73_v22 = vadd.f32 1.0, %v2675_v41  ;;  %v2408_v43 = vld [vmem:[%s3359_s3 + $0x48] sm:$0xff]  }
  0xcd   :  { %v1337_v35 = vrot.slane %v2937_v3, %v2643_v23 }
  0xce   :  { %v1148_v19 = vmax.f32 %v1140_v37, 0.0  ;;  %v2939_v27 = vadd.f32 %v1140_v37, %v1086_v58  ;;  %v1144_v1 = vmax.f32 %v1136_v15, 0.0  ;;  %v2941_v21 = vadd.f32 %v1136_v15, %v1082_v12  ;;  %2204 = vmatmul.mubr.msk.bf16.gmra.mrb[4].mxu0 %vm249_vm4, %v2406_v0  ;;  %v1105_v29 = vpop.permute.xlu1 %1104  ;;  %v1103_v31 = vpop.permute.xlu0 %1102  ;;  %1177 = vmatprep.subr.bf16.mxu0 %v1153_v16 }
  0xcf   :  { %v1108_v39 = vsel %vm1106_vm9, %v1101_v56, %v1105_v29  ;;  %v1114_v7 = vsel %vm1106_vm9, %v1105_v29, %v1093_v32  ;;  %v1107_v44 = vsel %vm1106_vm9, %v1099_v25, %v1103_v31  ;;  %v1113_v45 = vsel %vm1106_vm9, %v1103_v31, %v1091_v34  ;;  %992 = vmatprep.mubr.bf16.mxu0 %v2475_v6 }
  0xd0   :  { %v1142_v48 = vmul.f32 %v1127_v13, %v1108_v39  ;;  %v1143_v51 = vmul.f32 %v1131_v2, %v1114_v7  ;;  %v1138_v53 = vmul.f32 %v1127_v13, %v1107_v44  ;;  %v1139_v54 = vmul.f32 %v1131_v2, %v1113_v45 }
  0xd1   :  { %v1152_v46 = vpack.c.bf16 %v1148_v19, %v1144_v1  ;;  %v74_v19 = vadd.f32 %v2723_v33, %v73_v22 }
  0xd2   :  { %v1151_v60 = vmax.f32 %v1143_v51, 0.0  ;;  %v2959_v10 = vadd.f32 %v1142_v48, %v1088_v38  ;;  %v2961_v61 = vadd.f32 %v1143_v51, %v1089_v40  ;;  %v1315_v56 = vpop.permute.xlu1 %1314  ;;  %v1313_v25 = vpop.permute.xlu0 %1312  ;;  %v1147_v57 = vmax.f32 %v1139_v54, 0.0 }
  0xd3   :  { %v2966_v59 = vadd.f32 %v1138_v53, %v1084_v36  ;;  %v2968_v8 = vadd.f32 %v1139_v54, %v1085_v26  ;;  %2206 = vmatmul.mubr.msk.bf16.gmra.mrb[4].mxu1 %vm249_vm4, %v2406_v0  ;;  %v1150_v5 = vmax.f32 %v1142_v48, 0.0  ;;  %v1146_v49 = vmax.f32 %v1138_v53, 0.0 }
  0xd4   :  { %1045 = vmatprep.mubr.bf16.mxu1 %v2475_v6  ;;  %v1155_v62 = vpack.c.bf16 %v1151_v60, %v1147_v57  ;;  %v75_v36 = vmul.f32 %v74_v19, %v2614_v14 }
  0xd5   :  { %v1154_v9 = vpack.c.bf16 %v1150_v5, %v1146_v49 }
  0xd6   :  { %2213 = vmatmul.mubr.msk.bf16.vlgmr.msra.gmra.mrb[0].mxu0 %vm249_vm4, %v2407_v4  ;;  %v1319_v47 = vpop.permute.xlu1 %1318  ;;  %v1317_v63 = vpop.permute.xlu0 %1316  ;;  %1230 = vmatprep.subr.bf16.mxu1 %v1155_v62  ;;  %2417 = vrcp.f32 %v75_v36 }
  0xd7   :  { %v1328_v50 = vsel %vm1324_vm10, %v1315_v56, %v1319_v47  ;;  %v1327_v52 = vsel %vm1324_vm10, %v1313_v25, %v1317_v63  ;;  %1178 = vmatpush1.bf16.msra.mxu0 %v1152_v46  ;;  %1002 = vmatprep.mubr.bf16.mxu0 %v2475_v6 }
  0xd8   :  { %v1359_v13 = vmul.f32 %v1341_v42, %v1328_v50  ;;  %v1355_v2 = vmul.f32 %v1341_v42, %v1327_v52 }
  0xda   :  { %v1367_v32 = vmax.f32 %v1359_v13, 0.0  ;;  %v2987_v34 = vadd.f32 %v1359_v13, %v2917_v20  ;;  %v1363_v0 = vmax.f32 %v1355_v2, 0.0  ;;  %v2990_v58 = vadd.f32 %v1355_v2, %v2919_v55  ;;  %v1311_v24 = vpop.permute.xlu1 %1310  ;;  %v1309_v12 = vpop.permute.xlu0 %1308 }
  0xdb   :  { %v1330_v37 = vsel %vm1324_vm10, %v1311_v24, %v1315_v56  ;;  %v1329_v41 = vsel %vm1324_vm10, %v1309_v12, %v1313_v25  ;;  %2215 = vmatmul.mubr.msk.bf16.vlgmr.msra.gmra.mrb[0].mxu1 %vm249_vm4, %v2407_v4  ;;  %v1345_v20 = vrot.slane %v2937_v3, %v2652_v28  ;;  %v1349_v55 = vrot.slane %v2937_v3, %v2656_v30  ;;  %v2409_v4 = vld [vmem:[%s3359_s3 + $0x50] sm:$0xff]  }
  0xdc   :  { %v1358_v15 = vmul.f32 %v1337_v35, %v1330_v37  ;;  %v1354_v16 = vmul.f32 %v1337_v35, %v1329_v41  ;;  %1231 = vmatpush1.bf16.msra.mxu1 %v1154_v9  ;;  %1055 = vmatprep.mubr.bf16.mxu1 %v2475_v6  ;;  %v1371_v38 = vpack.c.bf16 %v1367_v32, %v1363_v0 }
  0xdd   :  { %v1554_v9 = vrot.slane %v2597_v11, %v2643_v23 }
  0xde   :  { %v1366_v1 = vmax.f32 %v1358_v15, 0.0  ;;  %v3007_v29 = vadd.f32 %v1358_v15, %v2939_v27  ;;  %v1362_v31 = vmax.f32 %v1354_v16, 0.0  ;;  %v3010_v39 = vadd.f32 %v1354_v16, %v2941_v21  ;;  %2214 = vmatmul.mubr.msk.bf16.gmra.mrb[4].mxu0 %vm249_vm4, %v2408_v43  ;;  %v1323_v3 = vpop.permute.xlu1 %1322  ;;  %v1321_v7 = vpop.permute.xlu0 %1320  ;;  %1395 = vmatprep.subr.bf16.mxu0 %v1371_v38 }
  0xdf   :  { %v1326_v44 = vsel %vm1324_vm10, %v1319_v47, %v1323_v3  ;;  %v1332_v45 = vsel %vm1324_vm10, %v1323_v3, %v1311_v24  ;;  %v1325_v27 = vsel %vm1324_vm10, %v1317_v63, %v1321_v7  ;;  %v1331_v40 = vsel %vm1324_vm10, %v1321_v7, %v1309_v12  ;;  %1209 = vmatprep.mubr.bf16.mxu0 %v2475_v6  ;;  %v2410_v24 = vld [vmem:[%s3359_s3 + $0x58] sm:$0xff]  }
  0xe0   :  { %v1360_v21 = vmul.f32 %v1345_v20, %v1326_v44  ;;  %v1361_v48 = vmul.f32 %v1349_v55, %v1332_v45  ;;  %v1356_v51 = vmul.f32 %v1345_v20, %v1325_v27  ;;  %v1357_v53 = vmul.f32 %v1349_v55, %v1331_v40  ;;  %v2418_v3 = vpop.eup %2417 }
  0xe1   :  { %v1370_v46 = vpack.c.bf16 %v1366_v1, %v1362_v31  ;;  %v76_v55 = vstv %s3365_s11 }
  0xe2   :  { %v1369_v26 = vmax.f32 %v1361_v48, 0.0  ;;  %v3026_v54 = vadd.f32 %v1360_v21, %v2959_v10  ;;  %v3029_v60 = vadd.f32 %v1361_v48, %v2961_v61  ;;  %v1532_v56 = vpop.permute.xlu1 %1531  ;;  %v1530_v25 = vpop.permute.xlu0 %1529  ;;  %v1365_v57 = vmax.f32 %v1357_v53, 0.0 }
  0xe3   :  { %v3035_v5 = vadd.f32 %v1356_v51, %v2966_v59  ;;  %v3038_v14 = vadd.f32 %v1357_v53, %v2968_v8  ;;  %2216 = vmatmul.mubr.msk.bf16.gmra.mrb[4].mxu1 %vm249_vm4, %v2408_v43  ;;  %v1368_v10 = vmax.f32 %v1360_v21, 0.0  ;;  %v1364_v49 = vmax.f32 %v1356_v51, 0.0 }
  0xe4   :  { %v1558_v61 = vrot.slane %v2597_v11, %v2628_v18  ;;  %1262 = vmatprep.mubr.bf16.mxu1 %v2475_v6  ;;  %v1373_v42 = vpack.c.bf16 %v1369_v26, %v1365_v57  ;;  %v1742_v21 = vmul.f32 %v2723_v33, %v2597_v11 }
  0xe5   :  { %v1372_v63 = vpack.c.bf16 %v1368_v10, %v1364_v49 }
  0xe6   :  { %2223 = vmatmul.mubr.msk.bf16.vlgmr.msra.gmra.mrb[0].mxu0 %vm249_vm4, %v2409_v4  ;;  %v1536_v59 = vpop.permute.xlu1 %1535  ;;  %v1534_v8 = vpop.permute.xlu0 %1533  ;;  %1448 = vmatprep.subr.bf16.mxu1 %v1373_v42  ;;  %v1776_v10 = vrot.slane %v1742_v21, %v2628_v18 }
  0xe7   :  { %v1545_v62 = vsel %vm1541_vm11, %v1532_v56, %v1536_v59  ;;  %v1544_v47 = vsel %vm1541_vm11, %v1530_v25, %v1534_v8  ;;  %1396 = vmatpush1.bf16.msra.mxu0 %v1370_v46  ;;  %1219 = vmatprep.mubr.bf16.mxu0 %v2475_v6 }
  0xe8   :  { %v1576_v50 = vmul.f32 %v1558_v61, %v1545_v62  ;;  %v1572_v52 = vmul.f32 %v1558_v61, %v1544_v47 }
  0xea   :  { %v1584_v13 = vmax.f32 %v1576_v50, 0.0  ;;  %v3065_v2 = vadd.f32 %v1576_v50, %v2987_v34  ;;  %v1580_v35 = vmax.f32 %v1572_v52, 0.0  ;;  %v3068_v22 = vadd.f32 %v1572_v52, %v2990_v58  ;;  %v1528_v32 = vpop.permute.xlu1 %1527  ;;  %v1526_v0 = vpop.permute.xlu0 %1525 }
  0xeb   :  { %v1547_v12 = vsel %vm1541_vm11, %v1528_v32, %v1532_v56  ;;  %v1546_v43 = vsel %vm1541_vm11, %v1526_v0, %v1530_v25  ;;  %2225 = vmatmul.mubr.msk.bf16.vlgmr.msra.gmra.mrb[0].mxu1 %vm249_vm4, %v2409_v4  ;;  %v1562_v34 = vrot.slane %v2597_v11, %v2652_v28  ;;  %v1566_v58 = vrot.slane %v2597_v11, %v2656_v30  ;;  %v2411_v25 = vld [vmem:[%s3359_s3 + $0x60] sm:$0xff]  }
  0xec   :  { %v1575_v37 = vmul.f32 %v1554_v9, %v1547_v12  ;;  %v1571_v41 = vmul.f32 %v1554_v9, %v1546_v43  ;;  %1449 = vmatpush1.bf16.msra.mxu1 %v1372_v63  ;;  %1272 = vmatprep.mubr.bf16.mxu1 %v2475_v6  ;;  %v1588_v20 = vpack.c.bf16 %v1584_v13, %v1580_v35 }
  0xed   :  { %v3110_v4 = vmul.f32 %v2418_v3, %v76_v55  ;;  %v1772_v63 = vrot.slane %v1742_v21, %v2643_v23 }
  0xee   :  { %v1583_v15 = vmax.f32 %v1575_v37, 0.0  ;;  %v3084_v16 = vadd.f32 %v1575_v37, %v3007_v29  ;;  %v1579_v38 = vmax.f32 %v1571_v41, 0.0  ;;  %v3087_v19 = vadd.f32 %v1571_v41, %v3010_v39  ;;  %2224 = vmatmul.mubr.msk.bf16.gmra.mrb[4].mxu0 %vm249_vm4, %v2410_v24  ;;  %v1540_v1 = vpop.permute.xlu1 %1539  ;;  %v1538_v31 = vpop.permute.xlu0 %1537  ;;  %1612 = vmatprep.subr.bf16.mxu0 %v1588_v20 }
  0xef   :  { %v1543_v7 = vsel %vm1541_vm11, %v1536_v59, %v1540_v1  ;;  %v1549_v44 = vsel %vm1541_vm11, %v1540_v1, %v1528_v32  ;;  %v1542_v29 = vsel %vm1541_vm11, %v1534_v8, %v1538_v31  ;;  %v1548_v45 = vsel %vm1541_vm11, %v1538_v31, %v1526_v0  ;;  %1427 = vmatprep.mubr.bf16.mxu0 %v2475_v6  ;;  %v2412_v32 = vld [vmem:[%s3359_s3 + $0x68] sm:$0xff]  }
  0xf0   :  { %v1577_v39 = vmul.f32 %v1562_v34, %v1543_v7  ;;  %v1578_v27 = vmul.f32 %v1566_v58, %v1549_v44  ;;  %v1573_v40 = vmul.f32 %v1562_v34, %v1542_v29  ;;  %v1574_v48 = vmul.f32 %v1566_v58, %v1548_v45 }
  0xf1   :  { %v1587_v46 = vpack.c.bf16 %v1583_v15, %v1579_v38  ;;  %v1784_v37 = vrot.slane %v1742_v21, %v2656_v30  ;;  %v2108_v45 = vrot.slane %v3110_v4, %v2652_v28 }
  0xf2   :  { %v1586_v51 = vmax.f32 %v1578_v27, 0.0  ;;  %v3102_v53 = vadd.f32 %v1577_v39, %v3026_v54  ;;  %v3105_v36 = vadd.f32 %v1578_v27, %v3029_v60  ;;  %v1750_v26 = vpop.permute.xlu1 %1749  ;;  %v1748_v56 = vpop.permute.xlu0 %1747  ;;  %v1582_v57 = vmax.f32 %v1574_v48, 0.0 }
  0xf3   :  { %v3113_v11 = vadd.f32 %v1573_v40, %v3035_v5  ;;  %v3116_v33 = vadd.f32 %v1574_v48, %v3038_v14  ;;  %2226 = vmatmul.mubr.msk.bf16.gmra.mrb[4].mxu1 %vm249_vm4, %v2410_v24  ;;  %v1585_v54 = vmax.f32 %v1577_v39, 0.0  ;;  %v1581_v60 = vmax.f32 %v1573_v40, 0.0 }
  0xf4   :  { %1480 = vmatprep.mubr.bf16.mxu1 %v2475_v6  ;;  %v1590_v49 = vpack.c.bf16 %v1586_v51, %v1582_v57  ;;  %v2104_v14 = vrot.slane %v3110_v4, %v2628_v18  ;;  %v2100_v24 = vrot.slane %v3110_v4, %v2643_v23  ;;  %v2112_v27 = vrot.slane %v3110_v4, %v2656_v30  ;;  %v2413_v51 = vld [vmem:[%s3359_s3 + $0x70] sm:$0xff]  }
  0xf5   :  { %v1589_v8 = vpack.c.bf16 %v1585_v54, %v1581_v60 }
  0xf6   :  { %2233 = vmatmul.mubr.msk.bf16.vlgmr.msra.gmra.mrb[0].mxu0 %vm249_vm4, %v2411_v25  ;;  %v1754_v61 = vpop.permute.xlu1 %1753  ;;  %v1752_v42 = vpop.permute.xlu0 %1751  ;;  %1665 = vmatprep.subr.bf16.mxu1 %v1590_v49  ;;  %v2416_v49 = vld [vmem:[%s3359_s3 + $0x88] sm:$0xff]  }
  0xf7   :  { %v1763_v5 = vsel %vm1759_vm12, %v1750_v26, %v1754_v61  ;;  %v1762_v59 = vsel %vm1759_vm12, %v1748_v56, %v1752_v42  ;;  %1613 = vmatpush1.bf16.msra.mxu0 %v1587_v46  ;;  %1437 = vmatprep.mubr.bf16.mxu0 %v2475_v6 }
  0xf8   :  { %v1794_v62 = vmul.f32 %v1776_v10, %v1763_v5  ;;  %v1790_v47 = vmul.f32 %v1776_v10, %v1762_v59 }
  0xfa   :  { %v1802_v50 = vmax.f32 %v1794_v62, 0.0  ;;  %v1957_v52 = vadd.f32 %v1794_v62, %v3065_v2  ;;  %v1798_v9 = vmax.f32 %v1790_v47, 0.0  ;;  %v1953_v13 = vadd.f32 %v1790_v47, %v3068_v22  ;;  %v1746_v35 = vpop.permute.xlu1 %1745  ;;  %v1744_v18 = vpop.permute.xlu0 %1743 }
  0xfb   :  { %v1765_v0 = vsel %vm1759_vm12, %v1746_v35, %v1750_v26  ;;  %v1764_v12 = vsel %vm1759_vm12, %v1744_v18, %v1748_v56  ;;  %2235 = vmatmul.mubr.msk.bf16.vlgmr.msra.gmra.mrb[0].mxu1 %vm249_vm4, %v2411_v25  ;;  %v1780_v2 = vrot.slane %v1742_v21, %v2652_v28 }
  0xfc   :  { %v3144_v22 = vmul.f32 %v2104_v14, %v1957_v52  ;;  %v3146_v43 = vmul.f32 %v2104_v14, %v1953_v13  ;;  %v1793_v34 = vmul.f32 %v1772_v63, %v1765_v0  ;;  %v1789_v58 = vmul.f32 %v1772_v63, %v1764_v12  ;;  %1666 = vmatpush1.bf16.msra.mxu1 %v1589_v8 }
  0xfd   :  { %1490 = vmatprep.mubr.bf16.mxu1 %v2475_v6  ;;  %v1806_v41 = vpack.c.bf16 %v1802_v50, %v1798_v9 }
  0xfe   :  { %v1801_v23 = vmax.f32 %v1793_v34, 0.0  ;;  %v1956_v20 = vadd.f32 %v1793_v34, %v3084_v16  ;;  %v1797_v55 = vmax.f32 %v1789_v58, 0.0  ;;  %v1952_v15 = vadd.f32 %v1789_v58, %v3087_v19  ;;  %2234 = vmatmul.mubr.msk.bf16.gmra.mrb[4].mxu0 %vm249_vm4, %v2412_v32  ;;  %v1758_v38 = vpop.permute.xlu1 %1757  ;;  %v1756_v1 = vpop.permute.xlu0 %1755 }
  0xff   :  { %v1761_v31 = vsel %vm1759_vm12, %v1754_v61, %v1758_v38  ;;  %v1767_v3 = vsel %vm1759_vm12, %v1758_v38, %v1746_v35  ;;  %v1760_v7 = vsel %vm1759_vm12, %v1752_v42, %v1756_v1  ;;  %v1766_v44 = vsel %vm1759_vm12, %v1756_v1, %v1744_v18  ;;  %1644 = vmatprep.mubr.bf16.mxu0 %v2475_v6 }
 0x100   :  { %v3162_v16 = vmul.f32 %v2100_v24, %v1956_v20  ;;  %v3164_v19 = vmul.f32 %v2100_v24, %v1952_v15  ;;  %v1795_v29 = vmul.f32 %v1780_v2, %v1761_v31  ;;  %1830 = vmatprep.subr.bf16.mxu0 %v1806_v41  ;;  %v1796_v39 = vmul.f32 %v1784_v37, %v1767_v3 }
 0x101   :  { %v1791_v40 = vmul.f32 %v1780_v2, %v1760_v7  ;;  %v1792_v21 = vmul.f32 %v1784_v37, %v1766_v44  ;;  %v1805_v48 = vpack.c.bf16 %v1801_v23, %v1797_v55 }
 0x102   :  { %v1958_v17 = vadd.f32 %v1795_v29, %v3102_v53  ;;  %v1803_v26 = vmax.f32 %v1795_v29, 0.0  ;;  %v1804_v56 = vmax.f32 %v1796_v39, 0.0  ;;  %v1959_v25 = vadd.f32 %v1796_v39, %v3105_v36 }
 0x103   :  { %v1800_v46 = vmax.f32 %v1792_v21, 0.0  ;;  %2236 = vmatmul.mubr.msk.bf16.gmra.mrb[4].mxu1 %vm249_vm4, %v2412_v32  ;;  %v1799_v57 = vmax.f32 %v1791_v40, 0.0  ;;  %v1954_v30 = vadd.f32 %v1791_v40, %v3113_v11  ;;  %v1955_v4 = vadd.f32 %v1792_v21, %v3116_v33  ;;  %v2414_v11 = vld [vmem:[%s3359_s3 + $0x78] sm:$0xff]   ;;  %v2415_v33 = vld [vmem:[%s3359_s3 + $0x80] sm:$0xff]   ;;  %s2162_s3 = sld [smem:[#allocation2 + $0x3]] }
 0x104   :  { %v3176_v28 = vmul.f32 %v2108_v45, %v1958_v17  ;;  %1697 = vmatprep.mubr.bf16.mxu1 %v2475_v6  ;;  %v3181_v53 = vmul.f32 %v2112_v27, %v1959_v25 }
 0x105   :  { %v1808_v54 = vpack.c.bf16 %v1804_v56, %v1800_v46  ;;  %v3183_v60 = vmul.f32 %v2108_v45, %v1954_v30  ;;  %v3185_v10 = vmul.f32 %v2112_v27, %v1955_v4  ;;  %v1807_v36 = vpack.c.bf16 %v1803_v26, %v1799_v57 }
 0x106   :  { %2243 = vmatmul.mubr.msk.bf16.vlgmr.msra.gmra.mrb[0].mxu0 %vm249_vm4, %v2413_v51 }
 0x107   :  { %1831 = vmatpush1.bf16.msra.mxu0 %v1805_v48  ;;  %1654 = vmatprep.mubr.bf16.mxu0 %v2475_v6 }
 0x108   :  { %1883 = vmatprep.subr.bf16.mxu1 %v1808_v54 }
 0x109   :  { %p45_p8 = scmp.gt.f32.partialorder %s2162_s3, 0.0  ;;  %p46_p9 = scmp.le.f32.partialorder %s2162_s3, 1.0 }
 0x10b   :  { %2245 = vmatmul.mubr.msk.bf16.vlgmr.msra.gmra.mrb[0].mxu1 %vm249_vm4, %v2413_v51  ;;  %p47_p12 = pnand %p46_p9, %p45_p8 }
 0x10c   :  { %1884 = vmatpush1.bf16.msra.mxu1 %v1807_v36  ;;  %1707 = vmatprep.mubr.bf16.mxu1 %v2475_v6 }
 0x10d   :  { %s3367_s3 = smov (%p47_p12, %s2162_s3), 0.0 }
 0x10e   :  { %2244 = vmatmul.mubr.msk.bf16.gmra.mrb[4].mxu0 %vm249_vm4, %v2414_v11 }
 0x10f   :  { %1862 = vmatprep.mubr.bf16.mxu0 %v2475_v6 }
 0x113   :  { %2246 = vmatmul.mubr.msk.bf16.gmra.mrb[4].mxu1 %vm249_vm4, %v2414_v11 }
 0x114   :  { %1915 = vmatprep.mubr.bf16.mxu1 %v2475_v6 }
 0x116   :  { %2253 = vmatmul.mubr.msk.bf16.vlgmr.msra.gmra.mrb[0].mxu0 %vm249_vm4, %v2415_v33 }
 0x117   :  { %1872 = vmatprep.mubr.bf16.mxu0 %v2475_v6 }
 0x11b   :  { %2255 = vmatmul.mubr.msk.bf16.vlgmr.msra.gmra.mrb[0].mxu1 %vm249_vm4, %v2415_v33 }
 0x11c   :  { %1925 = vmatprep.mubr.bf16.mxu1 %v2475_v6 }
 0x11e   :  { %2254 = vmatmul.mubr.msk.bf16.gmra.mrb[4].mxu0 %vm249_vm4, %v2416_v49 }
 0x123   :  { %2256 = vmatmul.mubr.msk.bf16.gmra.mrb[4].mxu1 %vm249_vm4, %v2416_v49 }
 0x1e9   :  { %v1864_v61 = vpop.f32.mrb[0].mxu0 }
 0x1ea   :  { %v1866_v42 = vpop.f32.mrb[1].mxu0 }
 0x1eb   :  { %v1969_v5 = vadd.f32 %v1866_v42, %v1864_v61  ;;  %v1868_v14 = vpop.f32.mrb[2].mxu0 }
 0x1ec   :  { %v1870_v59 = vpop.f32.mrb[3].mxu0 }
 0x1ed   :  { %v1974_v8 = vadd.f32 %v1870_v59, %v1868_v14 }
 0x1ee   :  { %v1917_v62 = vpop.f32.mrb[0].mxu1 }
 0x1ef   :  { %v1970_v47 = vadd.f32 %v1969_v5, %v1917_v62  ;;  %v1919_v63 = vpop.f32.mrb[1].mxu1 }
 0x1f0   :  { %v1921_v50 = vpop.f32.mrb[2].mxu1 }
 0x1f1   :  { %v1975_v52 = vadd.f32 %v1974_v8, %v1921_v50  ;;  %v1874_v9 = vpop.f32.mrb[4].mxu0  ;;  %v1923_v13 = vpop.f32.mrb[3].mxu1  ;;  %v1971_v35 = vadd.f32 %v1970_v47, %v1919_v63 }
 0x1f2   :  { %v1876_v18 = vpop.f32.mrb[5].mxu0 }
 0x1f3   :  { %v2033_v6 = vadd.f32 %v1876_v18, %v1874_v9  ;;  %1972 = vadd.xlane.f32.xlu0 %v1971_v35  ;;  %v1878_v32 = vpop.f32.mrb[6].mxu0  ;;  %v1976_v0 = vadd.f32 %v1975_v52, %v1923_v13 }
 0x1f4   :  { %v1880_v24 = vpop.f32.mrb[7].mxu0 }
 0x1f5   :  { %v2038_v12 = vadd.f32 %v1880_v24, %v1878_v32  ;;  %1977 = vadd.xlane.f32.xlu1 %v1976_v0 }
 0x1f6   :  { %v1927_v2 = vpop.f32.mrb[4].mxu1 }
 0x1f7   :  { %v2034_v34 = vadd.f32 %v2033_v6, %v1927_v2  ;;  %v1929_v58 = vpop.f32.mrb[5].mxu1 }
 0x1f8   :  { %v1931_v37 = vpop.f32.mrb[6].mxu1 }
 0x1f9   :  { %v2039_v41 = vadd.f32 %v2038_v12, %v1931_v37  ;;  %v1933_v23 = vpop.f32.mrb[7].mxu1  ;;  %v2035_v20 = vadd.f32 %v2034_v34, %v1929_v58 }
 0x1fb   :  { %v2040_v55 = vadd.f32 %v2039_v41, %v1933_v23  ;;  %2036 = vadd.xlane.f32.xlu0 %v2035_v20 }
 0x1ff   :  { %2041 = vadd.xlane.f32.xlu0 %v2040_v55 }
 0x280   :  { %v1973_v15 = vpop.xlane.xlu0 %1972 }
 0x281   :  { %v1980_v38 = vmul.f32 0.001953125, %v1973_v15 }
 0x282   :  { %v1978_v1 = vpop.xlane.xlu1 %1977 }
 0x283   :  { %v3210_v31 = vsub.f32 %v1864_v61, %v1980_v38  ;;  %v3212_v3 = vsub.f32 %v1866_v42, %v1980_v38  ;;  %v1981_v7 = vmul.f32 0.001953125, %v1978_v1  ;;  %v3214_v44 = vsub.f32 %v1917_v62, %v1980_v38 }
 0x284   :  { %v3216_v29 = vsub.f32 %v1919_v63, %v1980_v38 }
 0x285   :  { %v3218_v45 = vsub.f32 %v1868_v14, %v1981_v7  ;;  %v3220_v39 = vsub.f32 %v1870_v59, %v1981_v7  ;;  %v1990_v27 = vmul.f32 %v3210_v31, %v3210_v31  ;;  %v1991_v40 = vmul.f32 %v3212_v3, %v3212_v3 }
 0x286   :  { %v3226_v21 = vsub.f32 %v1921_v50, %v1981_v7  ;;  %v3228_v48 = vsub.f32 %v1923_v13, %v1981_v7  ;;  %v1992_v17 = vmul.f32 %v3214_v44, %v3214_v44  ;;  %v1993_v46 = vmul.f32 %v3216_v29, %v3216_v29 }
 0x287   :  { %v1998_v51 = vadd.f32 %v1991_v40, %v1990_v27  ;;  %v1994_v26 = vmul.f32 %v3218_v45, %v3218_v45  ;;  %v1995_v56 = vmul.f32 %v3220_v39, %v3220_v39 }
 0x288   :  { %v2037_v25 = vpop.xlane.xlu0 %2036  ;;  %v1996_v4 = vmul.f32 %v3226_v21, %v3226_v21  ;;  %v1997_v36 = vmul.f32 %v3228_v48, %v3228_v48 }
 0x289   :  { %v2043_v57 = vmul.f32 0.001953125, %v2037_v25  ;;  %v1999_v30 = vadd.f32 %v1998_v51, %v1992_v17  ;;  %v2003_v54 = vadd.f32 %v1995_v56, %v1994_v26  ;;  %v2014_v17 = vstv %s3367_s3 }
 0x28a   :  { %v1960_v25 = vstv %s3369_s29 }
 0x28b   :  { %v3242_v11 = vsub.f32 %v1874_v9, %v2043_v57  ;;  %v3244_v33 = vsub.f32 %v1876_v18, %v2043_v57  ;;  %v2000_v49 = vadd.f32 %v1999_v30, %v1993_v46  ;;  %v2004_v61 = vadd.f32 %v2003_v54, %v1996_v4  ;;  %v2427_v30 = vld [vmem:[%s3357_s1] sm:$0xff]  ;;  %v2428_v54 = vld [vmem:[%s3357_s1 + $0x8] sm:$0xff] }
 0x28c   :  { %v2042_v42 = vpop.xlane.xlu0 %2041  ;;  %v3246_v5 = vsub.f32 %v1927_v2, %v2043_v57  ;;  %v3248_v14 = vsub.f32 %v1929_v58, %v2043_v57  ;;  %v1961_v4 = vmul.f32 %v2427_v30, %v1960_v25 }
 0x28d   :  { %v2044_v59 = vmul.f32 0.001953125, %v2042_v42  ;;  %2001 = vadd.xlane.f32.xlu1 %v2000_v49  ;;  %v2005_v8 = vadd.f32 %v2004_v61, %v1997_v36  ;;  %v2053_v62 = vmul.f32 %v3242_v11, %v3242_v11  ;;  %v2054_v47 = vmul.f32 %v3244_v33, %v3244_v33  ;;  %v2429_v61 = vld [vmem:[%s3357_s1 + $0x10] sm:$0xff] }
 0x28e   :  { %v2055_v63 = vmul.f32 %v3246_v5, %v3246_v5  ;;  %v2056_v35 = vmul.f32 %v3248_v14, %v3248_v14  ;;  %v1962_v36 = vmul.f32 %v2428_v54, %v1960_v25  ;;  %v1963_v42 = vmul.f32 %v2429_v61, %v1960_v25 }
 0x28f   :  { %v3256_v50 = vsub.f32 %v1878_v32, %v2044_v59  ;;  %v3258_v52 = vsub.f32 %v1880_v24, %v2044_v59  ;;  %2006 = vadd.xlane.f32.xlu0 %v2005_v8  ;;  %v2061_v9 = vadd.f32 %v2054_v47, %v2053_v62  ;;  %v3260_v13 = vsub.f32 %v1931_v37, %v2044_v59  ;;  %v2430_v47 = vld [vmem:[%s3357_s1 + $0x18] sm:$0xff] }
 0x290   :  { %v3264_v6 = vsub.f32 %v1933_v23, %v2044_v59 }
 0x291   :  { %v2062_v18 = vadd.f32 %v2061_v9, %v2055_v63  ;;  %v2057_v0 = vmul.f32 %v3256_v50, %v3256_v50  ;;  %v2058_v12 = vmul.f32 %v3258_v52, %v3258_v52  ;;  %v2059_v24 = vmul.f32 %v3260_v13, %v3260_v13 }
 0x292   :  { %v2060_v34 = vmul.f32 %v3264_v6, %v3264_v6  ;;  %v1964_v63 = vmul.f32 %v2430_v47, %v1960_v25 }
 0x293   :  { %v2063_v32 = vadd.f32 %v2062_v18, %v2056_v35  ;;  %v2066_v2 = vadd.f32 %v2058_v12, %v2057_v0  ;;  %v2077_v35 = vstv %s3371_s30  ;;  %v2431_v18 = vld [vmem:[%s3357_s1 + $0x20] sm:$0xff] }
 0x294   :  { %v1965_v0 = vmul.f32 %v2431_v18, %v1960_v25 }
 0x295   :  { %2064 = vadd.xlane.f32.xlu1 %v2063_v32  ;;  %v2067_v58 = vadd.f32 %v2066_v2, %v2059_v24 }
 0x297   :  { %v2068_v37 = vadd.f32 %v2067_v58, %v2060_v34 }
 0x299   :  { %2069 = vadd.xlane.f32.xlu0 %v2068_v37 }
 0x31a   :  { %v2002_v41 = vpop.xlane.xlu1 %2001 }
 0x31b   :  { %v2008_v23 = vmul.f32 0.001953125, %v2002_v41 }
 0x31c   :  { %v2007_v20 = vpop.xlane.xlu0 %2006 }
 0x31d   :  { %v2010_v55 = vadd.f32 1e-05, %v2008_v23  ;;  %v2009_v15 = vmul.f32 0.001953125, %v2007_v20 }
 0x31f   :  { %2419 = vrsqrt.f32 %v2010_v55  ;;  %v2011_v38 = vadd.f32 1e-05, %v2009_v15 }
 0x321   :  { %2421 = vrsqrt.f32 %v2011_v38 }
 0x322   :  { %v2065_v1 = vpop.xlane.xlu1 %2064 }
 0x323   :  { %v2071_v7 = vmul.f32 0.001953125, %v2065_v1 }
 0x325   :  { %v2073_v27 = vadd.f32 1e-05, %v2071_v7 }
 0x326   :  { %v2070_v40 = vpop.xlane.xlu0 %2069 }
 0x327   :  { %2423 = vrsqrt.f32 %v2073_v27  ;;  %v2072_v51 = vmul.f32 0.001953125, %v2070_v40 }
 0x329   :  { %v2420_v26 = vpop.eup %2419  ;;  %v2074_v56 = vadd.f32 1e-05, %v2072_v51 }
 0x32a   :  { %v2015_v46 = vmul.f32 %v2420_v26, %v2014_v17 }
 0x32b   :  { %v2422_v57 = vpop.eup %2421  ;;  %2425 = vrsqrt.f32 %v2074_v56 }
 0x32c   :  { %v2016_v49 = vmul.f32 %v2422_v57, %v2014_v17  ;;  %v2017_v59 = vmul.f32 %v2015_v46, %v3210_v31  ;;  %v2018_v8 = vmul.f32 %v2015_v46, %v3212_v3  ;;  %v2019_v62 = vmul.f32 %v2015_v46, %v3214_v44  ;;  %v2432_v31 = vld [vmem:[%s3357_s1 + $0x28] sm:$0xff]  ;;  %v2433_v44 = vld [vmem:[%s3357_s1 + $0x30] sm:$0xff] }
 0x32d   :  { %v2020_v9 = vmul.f32 %v2015_v46, %v3216_v29  ;;  %v1966_v3 = vmul.f32 %v2432_v31, %v1960_v25  ;;  %v1967_v32 = vmul.f32 %v2433_v44, %v1960_v25  ;;  %v2434_v29 = vld [vmem:[%s3357_s1 + $0x38] sm:$0xff]  ;;  %s2484_s1 = smov [#allocation5]  }
 0x32e   :  { %v1968_v24 = vmul.f32 %v2434_v29, %v1960_v25  ;;  %v2021_v2 = vmul.f32 %v2016_v49, %v3218_v45  ;;  %v2025_v34 = vadd.f32 %v2017_v59, %v1961_v4  ;;  %v2026_v58 = vadd.f32 %v2018_v8, %v1962_v36  ;;  %s2146_s22 = sshll.u32 %s2484_s1, 4  ;;  %s2147_s22 = int_to_ptr.vmem [resolvable:$true] %s2146_s22 }
 0x32f   :  { %v2027_v37 = vadd.f32 %v2019_v62, %v1963_v42  ;;  %v2028_v23 = vadd.f32 %v2020_v9, %v1964_v63  ;;  %v2022_v20 = vmul.f32 %v2016_v49, %v3220_v39  ;;  %v2023_v55 = vmul.f32 %v2016_v49, %v3226_v21  ;;  %s2447_s0 = scalar_lea.vmem %s2147_s22, 1024  ;;  %p2452_p4 = scmp.lt.s32.totalorder %s2147_s22, %s2147_s22 }
 0x330   :  { %v2024_v15 = vmul.f32 %v2016_v49, %v3228_v48  ;;  %v2029_v40 = vadd.f32 %v2021_v2, %v1965_v0  ;;  %p2448_p3 = scmp.ne.s32.totalorder %s2147_s22, %s2447_s0  ;;  %p2453_p5 = scmp.lt.s32.totalorder %s2447_s0, %s2447_s0 }
 0x331   :  { %v2424_v12 = vpop.eup %2423  ;;  %v2030_v25 = vadd.f32 %v2022_v20, %v1966_v3  ;;  %v2031_v39 = vadd.f32 %v2023_v55, %v1967_v32 }
 0x332   :  { %v2078_v41 = vmul.f32 %v2424_v12, %v2077_v35  ;;  %v2032_v46 = vadd.f32 %v2024_v15, %v1968_v24  ;;  %p2454_p6 = por %p2453_p5, %p2452_p4 }
 0x334   :  { %v2080_v38 = vmul.f32 %v2078_v41, %v3242_v11  ;;  %v2081_v1 = vmul.f32 %v2078_v41, %v3244_v33  ;;  %v2082_v7 = vmul.f32 %v2078_v41, %v3246_v5  ;;  %v2083_v27 = vmul.f32 %v2078_v41, %v3248_v14  ;;  %p2455_p7 = pnand %p2454_p6, %p2448_p3 }
 0x335   :  { %v2426_v45 = vpop.eup %2425 }
 0x336   :  { %v2088_v17 = vadd.f32 %v2080_v38, %v2025_v34  ;;  %v2089_v51 = vadd.f32 %v2081_v1, %v2026_v58  ;;  %v2090_v26 = vadd.f32 %v2082_v7, %v2027_v37  ;;  %v2091_v56 = vadd.f32 %v2083_v27, %v2028_v23 }
 0x337   :  { %v2079_v21 = vmul.f32 %v2426_v45, %v2077_v35 }
 0x338   :  { %v2125_v48 = vadd.f32 %v3164_v19, %v2088_v17  ;;  %v2126_v11 = vadd.f32 %v3146_v43, %v2089_v51  ;;  %v2127_v33 = vadd.f32 %v3183_v60, %v2090_v26  ;;  %v2128_v5 = vadd.f32 %v3185_v10, %v2091_v56 }
 0x339   :  { %v2084_v14 = vmul.f32 %v2079_v21, %v3256_v50  ;;  %v2085_v57 = vmul.f32 %v2079_v21, %v3258_v52  ;;  %v2086_v30 = vmul.f32 %v2079_v21, %v3260_v13  ;;  %v2087_v4 = vmul.f32 %v2079_v21, %v3264_v6 }
 0x33a   :  { %2133 = vst [vmem:[#allocation5] sm:$0xff] %v2125_v48  ;;  %2134 = vst [vmem:[#allocation5 + $0x8] sm:$0xff] %v2126_v11 }
 0x33b   :  { %2135 = vst [vmem:[#allocation5 + $0x10] sm:$0xff] %v2127_v33  ;;  %2136 = vst [vmem:[#allocation5 + $0x18] sm:$0xff] %v2128_v5  ;;  %v2092_v19 = vadd.f32 %v2084_v14, %v2029_v40  ;;  %v2093_v43 = vadd.f32 %v2085_v57, %v2030_v25  ;;  %v2094_v54 = vadd.f32 %v2086_v30, %v2031_v39 }
 0x33c   :  { %v2095_v60 = vadd.f32 %v2087_v4, %v2032_v46 }
 0x33d   :  { %v2129_v10 = vadd.f32 %v3162_v16, %v2092_v19  ;;  %v2130_v50 = vadd.f32 %v3144_v22, %v2093_v43  ;;  %v2131_v52 = vadd.f32 %v3176_v28, %v2094_v54 }
 0x33e   :  { %v2132_v13 = vadd.f32 %v3181_v53, %v2095_v60 }
 0x33f   :  { %2137 = vst [vmem:[#allocation5 + $0x20] sm:$0xff] %v2129_v10  ;;  %2138 = vst [vmem:[#allocation5 + $0x28] sm:$0xff] %v2130_v50 }
 0x340   :  { %2139 = vst [vmem:[#allocation5 + $0x30] sm:$0xff] %v2131_v52  ;;  %2140 = vst [vmem:[#allocation5 + $0x38] sm:$0xff] %v2132_v13 }
 0x341   :  { %2458 = shalt.err (!%p2455_p7)
}
 0x342   :  { %s2459_s25 = scalar_lea.hbm %s3360_s4, 1024 }
 0x343   :  { %p2460_p8 = scmp.ne.s32.totalorder %s3360_s4, %s2459_s25  ;;  %p2463_p9 = scmp.lt.u32.totalorder %s2459_s25, %s3360_s4 }
 0x345   :  { %p2465_p10 = pnand %p2463_p9, %p2460_p8 }
 0x347   :  { %2468 = shalt.err (!%p2465_p10)
}
 0x348   :  { %s2485_s29 = smov 512   ;;  %s2486_s30 = smov 32  }
 0x349   :  { %2152 = dma.vmem_to_hbm [thread:$0]  %s2147_s22, 1024, %s3360_s4, [#allocation3], %s2485_s29, %s2485_s29, %s2486_s30  }
 0x34a   :  { %2471 = dma.done.wait [#allocation3], 1024  }
 0x34b   :  { %2472 = vsyncadd [#allocation3], 4294966272 }
 0x34c   :  { %2156 = vsyncpa [#allocation3], 1 }
 0x34d   :  { %2157 = vsyncpa [#allocation4], 1 }

</bundles_post_ra>
